<compile_context>
chip_gen: v6e
topology: v6e:2x2x1
jax: 0.10.0
libtpu: 0.0.40
codegen_flags: <defaults>
</compile_context>

<pallas_src>
import jax
import jax.numpy as jnp
from jax.experimental import pallas as pl
from jax.experimental.pallas import tpu as pltpu

DIM = 32
NUM_HEADS = 4
HEAD_DIM = DIM // NUM_HEADS
SCALE = HEAD_DIM ** (-0.5)
MLP_HIDDEN = int(DIM * 2.0)
LN_EPS = 1e-5


def _full_spec(shape):
    nd = len(shape)
    return pl.BlockSpec(shape, lambda i, _nd=nd: (0,) * _nd)


# --------------------------- fused Pallas kernel -----------------------------

def _crysformer_kernel(
    # data
    h_ref, e_ref, S_ref, D_ref, M_ref,
    # head-grouping constants
    hmask_ref,   # (DIM, H)  : channel d belongs to head d // HEAD_DIM
    hexp_ref,    # (H, DIM)  : transpose of hmask (broadcast per-head attn to channels)
    havg_ref,    # (DIM, Hd) : mean over heads (contiguous HEAD_DIM chunks)
    # weights
    ca_q_w, ca_kv_w, ca_hproj_w, ca_hproj_b,
    co_qkv_w, co_c_w, co_hproj_w, co_hproj_b, co_eproj_w, co_eproj_b,
    m1_w1, m1_b1, m1_w2, m1_b2, m2_w1, m2_b1, m2_w2, m2_b2,
    ln_g_ref, ln_b_ref,          # (5, DIM) each: norm1..norm5 gamma / beta
    # outputs
    h_out_ref, e_out_ref, smean_ref,
):
    def mm(a, b):
        return jnp.dot(a, b, preferred_element_type=jnp.float32)

    h = h_ref[...]
    e = e_ref[...]
    S = S_ref[...]
    D = D_ref[...]
    M = M_ref[...]
    hmask = hmask_ref[...]
    hexp = hexp_ref[...]
    ln_g = ln_g_ref[...]
    ln_b = ln_b_ref[...]

    def layer_norm(x, idx):
        g = ln_g[idx:idx + 1, :]
        b = ln_b[idx:idx + 1, :]
        mean = jnp.mean(x, axis=-1, keepdims=True)
        var = jnp.mean((x - mean) ** 2, axis=-1, keepdims=True)
        return (x - mean) * jax.lax.rsqrt(var + LN_EPS) * g + b

    def edge_softmax(logits):
        # logits: (E, H); softmax over edges grouped by destination node.
        # Global per-head max subtraction is exact for the softmax ratios and
        # keeps exp() in range; denominators come from two MXU matmuls.
        z = jnp.max(logits, axis=0, keepdims=True)        # (1, H)
        p = jnp.exp(logits - z)                           # (E, H)
        denom_n = mm(M, p)                                # (N, H) per-dst sum
        denom_e = mm(D, denom_n)                          # (E, H) gathered to edges
        return p / denom_e

    # --------------------- CrossAttention + norm1 ---------------------------
    q = mm(h, ca_q_w[...])                                # (N, DIM)
    kv = mm(e, ca_kv_w[...])                              # (E, 2*DIM)
    k = kv[:, :DIM]
    v = kv[:, DIM:]
    q_dst = mm(D, q)                                      # (E, DIM)
    logits = mm(q_dst * k, hmask) * SCALE                 # (E, H) per-head dot
    attn = edge_softmax(logits)                           # (E, H)
    weighted = mm(attn, hexp) * v                         # (E, DIM)
    h_agg = mm(M, weighted)                               # (N, DIM) scatter-sum to dst
    h_ca = mm(h_agg, ca_hproj_w[...]) + ca_hproj_b[...]
    h = layer_norm(h + h_ca, 0)

    # ----------------- ConditionalAttention + norm2/3 -----------------------
    qkv = mm(h, co_qkv_w[...])                            # (N, 3*DIM)
    q2 = qkv[:, :DIM]
    kv2 = qkv[:, DIM:]                                    # [k | v], (N, 2*DIM)
    c = jnp.tanh(mm(e, co_c_w[...]))                      # (E, DIM), gated
    q_dst2 = mm(D, q2)                                    # (E, DIM)
    kv_src = mm(S, kv2)                                   # (E, 2*DIM), one wide gather
    k_src = kv_src[:, :DIM]
    v_src = kv_src[:, DIM:]
    score = k_src * q_dst2 * c                            # (E, DIM)
    logits2 = mm(score, hmask) * SCALE                    # (E, H)
    attn2 = edge_softmax(logits2)                         # (E, H)
    weighted2 = mm(attn2, hexp) * v_src                   # (E, DIM)
    h_agg2 = mm(M, weighted2)                             # (N, DIM)
    h_cond = mm(h_agg2, co_hproj_w[...]) + co_hproj_b[...]
    e_cond = mm(score, co_eproj_w[...]) + co_eproj_b[...]
    smean_ref[...] = mm(score, havg_ref[...])             # (E, HEAD_DIM) = score.mean(dim=1)
    h = layer_norm(h + h_cond, 1)
    e = layer_norm(e + e_cond, 2)

    # ----------------------- MLPs + norm4/5 ---------------------------------
    h_mid = jnp.maximum(mm(h, m1_w1[...]) + m1_b1[...], 0.0)
    h_mlp = mm(h_mid, m1_w2[...]) + m1_b2[...]
    h = layer_norm(h + h_mlp, 3)

    e_mid = jnp.maximum(mm(e, m2_w1[...]) + m2_b1[...], 0.0)
    e_mlp = mm(e_mid, m2_w2[...]) + m2_b2[...]
    e = layer_norm(e + e_mlp, 4)

    h_out_ref[...] = h
    e_out_ref[...] = e


# --------------------------- wrapper -----------------------------------------

def crysformer_layer(params, h, e, S, D, M):
    N = h.shape[0]
    E = e.shape[0]

    d_idx = jnp.arange(DIM, dtype=jnp.int32)
    hmask = (d_idx[:, None] // HEAD_DIM ==
             jnp.arange(NUM_HEADS, dtype=jnp.int32)[None, :]).astype(jnp.float32)
    hexp = hmask.T
    havg = (d_idx[:, None] % HEAD_DIM ==
            jnp.arange(HEAD_DIM, dtype=jnp.int32)[None, :]).astype(jnp.float32) / NUM_HEADS

    ln_g = jnp.stack([params[f"n{i}_g"] for i in range(1, 6)], axis=0)
    ln_b = jnp.stack([params[f"n{i}_b"] for i in range(1, 6)], axis=0)

    def b2(x):
        return x.reshape(1, -1)

    inputs = (
        h, e, S, D, M, hmask, hexp, havg,
        params["ca_q_w"], params["ca_kv_w"], params["ca_hproj_w"], b2(params["ca_hproj_b"]),
        params["co_qkv_w"], params["co_c_w"], params["co_hproj_w"], b2(params["co_hproj_b"]),
        params["co_eproj_w"], b2(params["co_eproj_b"]),
        params["m1_w1"], b2(params["m1_b1"]), params["m1_w2"], b2(params["m1_b2"]),
        params["m2_w1"], b2(params["m2_b1"]), params["m2_w2"], b2(params["m2_b2"]),
        ln_g, ln_b,
    )

    out_shape = (
        jax.ShapeDtypeStruct((N, DIM), jnp.float32),        # h_out
        jax.ShapeDtypeStruct((E, DIM), jnp.float32),        # e_out
        jax.ShapeDtypeStruct((E, HEAD_DIM), jnp.float32),   # score.mean(dim=1)
    )

    return pl.pallas_call(
        _crysformer_kernel,
        grid=(1,),
        in_specs=[_full_spec(x.shape) for x in inputs],
        out_specs=tuple(_full_spec(s.shape) for s in out_shape),
        out_shape=out_shape,
        compiler_params=pltpu.CompilerParams(
            dimension_semantics=("arbitrary",),
        ),
    )(*inputs)


# --------------------------- pure-JAX reference (for verification) -----------

def reference_layer(params, h, e, src, dst, n_nodes):
    def ln(x, g, b):
        mean = x.mean(-1, keepdims=True)
        var = ((x - mean) ** 2).mean(-1, keepdims=True)
        return (x - mean) / jnp.sqrt(var + LN_EPS) * g + b

    def edge_softmax(logits):  # (E, H), per-dst softmax with per-dst max
        mx = jnp.full((n_nodes, NUM_HEADS), -jnp.inf, jnp.float32).at[dst].max(logits)
        p = jnp.exp(logits - mx[dst])
        den = jnp.zeros((n_nodes, NUM_HEADS), jnp.float32).at[dst].add(p)
        return p / den[dst]

    # CrossAttention
    q = (h @ params["ca_q_w"]).reshape(-1, NUM_HEADS, HEAD_DIM)
    kv = e @ params["ca_kv_w"]
    k = kv[:, :DIM].reshape(-1, NUM_HEADS, HEAD_DIM)
    v = kv[:, DIM:].reshape(-1, NUM_HEADS, HEAD_DIM)
    logit = (q[dst] * k).sum(-1) * SCALE
    attn = edge_softmax(logit)[..., None]
    msg = attn * v
    h_agg = jnp.zeros((n_nodes, NUM_HEADS, HEAD_DIM), jnp.float32).at[dst].add(msg)
    h_ca = h_agg.reshape(n_nodes, DIM) @ params["ca_hproj_w"] + params["ca_hproj_b"]
    h = ln(h + h_ca, params["n1_g"], params["n1_b"])

    # ConditionalAttention
    qkv = h @ params["co_qkv_w"]
    q2 = qkv[:, :DIM].reshape(-1, NUM_HEADS, HEAD_DIM)
    k2 = qkv[:, DIM:2 * DIM].reshape(-1, NUM_HEADS, HEAD_DIM)
    v2 = qkv[:, 2 * DIM:].reshape(-1, NUM_HEADS, HEAD_DIM)
    c = jnp.tanh(e @ params["co_c_w"]).reshape(-1, NUM_HEADS, HEAD_DIM)
    score = k2[src] * q2[dst] * c
    logit2 = score.sum(-1) * SCALE
    attn2 = edge_softmax(logit2)[..., None]
    msg2 = attn2 * v2[src]
    h_agg2 = jnp.zeros((n_nodes, NUM_HEADS, HEAD_DIM), jnp.float32).at[dst].add(msg2)
    h_ = h_agg2.reshape(n_nodes, DIM) @ params["co_hproj_w"] + params["co_hproj_b"]
    e_ = score.reshape(-1, DIM) @ params["co_eproj_w"] + params["co_eproj_b"]
    score_mean = score.mean(axis=1)
    h = ln(h + h_, params["n2_g"], params["n2_b"])
    e = ln(e + e_, params["n3_g"], params["n3_b"])

    h_m = jnp.maximum(h @ params["m1_w1"] + params["m1_b1"], 0.0) @ params["m1_w2"] + params["m1_b2"]
    h = ln(h + h_m, params["n4_g"], params["n4_b"])
    e_m = jnp.maximum(e @ params["m2_w1"] + params["m2_b1"], 0.0) @ params["m2_w2"] + params["m2_b2"]
    e = ln(e + e_m, params["n5_g"], params["n5_b"])
    return h, e, score_mean


# --------------------------- params ------------------------------------------

def init_params(key):
    keys = jax.random.split(key, 24)
    it = iter(keys)

    def w(*shape):
        return jax.random.normal(next(it), shape, jnp.float32) * 0.05

    def b(*shape):
        return jax.random.normal(next(it), shape, jnp.float32) * 0.01

    p = dict(
        ca_q_w=w(DIM, DIM),
        ca_kv_w=w(DIM, 2 * DIM),
        ca_hproj_w=w(DIM, DIM), ca_hproj_b=b(DIM),
        co_qkv_w=w(DIM, 3 * DIM),
        co_c_w=w(DIM, DIM),
        co_hproj_w=w(DIM, DIM), co_hproj_b=b(DIM),
        co_eproj_w=w(DIM, DIM), co_eproj_b=b(DIM),
        m1_w1=w(DIM, MLP_HIDDEN), m1_b1=b(MLP_HIDDEN),
        m1_w2=w(MLP_HIDDEN, DIM), m1_b2=b(DIM),
        m2_w1=w(DIM, MLP_HIDDEN), m2_b1=b(MLP_HIDDEN),
        m2_w2=w(MLP_HIDDEN, DIM), m2_b2=b(DIM),
        n1_g=jnp.ones((DIM,), jnp.float32), n1_b=jnp.zeros((DIM,), jnp.float32),
        n2_g=jnp.ones((DIM,), jnp.float32), n2_b=jnp.zeros((DIM,), jnp.float32),
        n3_g=jnp.ones((DIM,), jnp.float32), n3_b=jnp.zeros((DIM,), jnp.float32),
        n4_g=jnp.ones((DIM,), jnp.float32), n4_b=jnp.zeros((DIM,), jnp.float32),
        n5_g=jnp.ones((DIM,), jnp.float32), n5_b=jnp.zeros((DIM,), jnp.float32),
    )
    return p


if __name__ == "__main__":
    key = jax.random.PRNGKey(0)
    k_h, k_e, k_p = jax.random.split(key, 3)

    N, E = 8, 16  # small graph: 8 nodes, 16 edges
    h0 = jax.random.normal(k_h, (N, DIM), jnp.float32)
    e0 = jax.random.normal(k_e, (E, DIM), jnp.float32)

    # deterministic graph connectivity
    src = jnp.arange(E, dtype=jnp.int32) % N
    dst = (jnp.arange(E, dtype=jnp.int32) * 5 + 2) % N
    S = jax.nn.one_hot(src, N, dtype=jnp.float32)   # (E, N)
    D = jax.nn.one_hot(dst, N, dtype=jnp.float32)   # (E, N)
    M = D.T                                         # (N, E)

    params = init_params(k_p)

    fwd = jax.jit(crysformer_layer)
    h_out, e_out, score_mean = fwd(params, h0, e0, S, D, M)
    jax.block_until_ready((h_out, e_out, score_mean))

    assert h_out.shape == (N, DIM)
    assert e_out.shape == (E, DIM)
    assert score_mean.shape == (E, HEAD_DIM)

    # correctness check against a pure-JAX segment-op reference
    h_r, e_r, sm_r = jax.jit(reference_layer, static_argnums=5)(params, h0, e0, src, dst, N)
    jax.block_until_ready((h_r, e_r, sm_r))
    assert jnp.allclose(h_out, h_r, atol=5e-2, rtol=5e-2)
    assert jnp.allclose(e_out, e_r, atol=5e-2, rtol=5e-2)
    assert jnp.allclose(score_mean, sm_r, atol=5e-2, rtol=5e-2)

    print("KERNEL_OK")
</pallas_src>

<mosaic_0001>
module attributes {stable_mosaic.version = 11 : i64} {
  func.func @_crysformer_kernel(%arg0: i32, %arg1: memref<8x32xf32, #tpu.memory_space<vmem>>, %arg2: memref<16x32xf32, #tpu.memory_space<vmem>>, %arg3: memref<16x8xf32, #tpu.memory_space<vmem>>, %arg4: memref<16x8xf32, #tpu.memory_space<vmem>>, %arg5: memref<8x16xf32, #tpu.memory_space<vmem>>, %arg6: memref<32x4xf32, #tpu.memory_space<vmem>>, %arg7: memref<4x32xf32, #tpu.memory_space<vmem>>, %arg8: memref<32x8xf32, #tpu.memory_space<vmem>>, %arg9: memref<32x32xf32, #tpu.memory_space<vmem>>, %arg10: memref<32x64xf32, #tpu.memory_space<vmem>>, %arg11: memref<32x32xf32, #tpu.memory_space<vmem>>, %arg12: memref<1x32xf32, #tpu.memory_space<vmem>>, %arg13: memref<32x96xf32, #tpu.memory_space<vmem>>, %arg14: memref<32x32xf32, #tpu.memory_space<vmem>>, %arg15: memref<32x32xf32, #tpu.memory_space<vmem>>, %arg16: memref<1x32xf32, #tpu.memory_space<vmem>>, %arg17: memref<32x32xf32, #tpu.memory_space<vmem>>, %arg18: memref<1x32xf32, #tpu.memory_space<vmem>>, %arg19: memref<32x64xf32, #tpu.memory_space<vmem>>, %arg20: memref<1x64xf32, #tpu.memory_space<vmem>>, %arg21: memref<64x32xf32, #tpu.memory_space<vmem>>, %arg22: memref<1x32xf32, #tpu.memory_space<vmem>>, %arg23: memref<32x64xf32, #tpu.memory_space<vmem>>, %arg24: memref<1x64xf32, #tpu.memory_space<vmem>>, %arg25: memref<64x32xf32, #tpu.memory_space<vmem>>, %arg26: memref<1x32xf32, #tpu.memory_space<vmem>>, %arg27: memref<5x32xf32, #tpu.memory_space<vmem>>, %arg28: memref<5x32xf32, #tpu.memory_space<vmem>>, %arg29: memref<8x32xf32, #tpu.memory_space<vmem>>, %arg30: memref<16x32xf32, #tpu.memory_space<vmem>>, %arg31: memref<16x8xf32, #tpu.memory_space<vmem>>) attributes {dimension_semantics = [#tpu.dimension_semantics<arbitrary>], iteration_bounds = array<i64: 1>, scalar_prefetch = 0 : i64, scratch_operands = 0 : i64, tpu.core_type = #tpu.core_type<tc>, window_params = [{pipeline_mode = #tpu.pipeline_mode<synchronous>, transform_indices = @transform_0, window_bounds = array<i64: 8, 32>}, {pipeline_mode = #tpu.pipeline_mode<synchronous>, transform_indices = @transform_1, window_bounds = array<i64: 16, 32>}, {pipeline_mode = #tpu.pipeline_mode<synchronous>, transform_indices = @transform_2, window_bounds = array<i64: 16, 8>}, {pipeline_mode = #tpu.pipeline_mode<synchronous>, transform_indices = @transform_3, window_bounds = array<i64: 16, 8>}, {pipeline_mode = #tpu.pipeline_mode<synchronous>, transform_indices = @transform_4, window_bounds = array<i64: 8, 16>}, {pipeline_mode = #tpu.pipeline_mode<synchronous>, transform_indices = @transform_5, window_bounds = array<i64: 32, 4>}, {pipeline_mode = #tpu.pipeline_mode<synchronous>, transform_indices = @transform_6, window_bounds = array<i64: 4, 32>}, {pipeline_mode = #tpu.pipeline_mode<synchronous>, transform_indices = @transform_7, window_bounds = array<i64: 32, 8>}, {pipeline_mode = #tpu.pipeline_mode<synchronous>, transform_indices = @transform_8, window_bounds = array<i64: 32, 32>}, {pipeline_mode = #tpu.pipeline_mode<synchronous>, transform_indices = @transform_9, window_bounds = array<i64: 32, 64>}, {pipeline_mode = #tpu.pipeline_mode<synchronous>, transform_indices = @transform_10, window_bounds = array<i64: 32, 32>}, {pipeline_mode = #tpu.pipeline_mode<synchronous>, transform_indices = @transform_11, window_bounds = array<i64: 1, 32>}, {pipeline_mode = #tpu.pipeline_mode<synchronous>, transform_indices = @transform_12, window_bounds = array<i64: 32, 96>}, {pipeline_mode = #tpu.pipeline_mode<synchronous>, transform_indices = @transform_13, window_bounds = array<i64: 32, 32>}, {pipeline_mode = #tpu.pipeline_mode<synchronous>, transform_indices = @transform_14, window_bounds = array<i64: 32, 32>}, {pipeline_mode = #tpu.pipeline_mode<synchronous>, transform_indices = @transform_15, window_bounds = array<i64: 1, 32>}, {pipeline_mode = #tpu.pipeline_mode<synchronous>, transform_indices = @transform_16, window_bounds = array<i64: 32, 32>}, {pipeline_mode = #tpu.pipeline_mode<synchronous>, transform_indices = @transform_17, window_bounds = array<i64: 1, 32>}, {pipeline_mode = #tpu.pipeline_mode<synchronous>, transform_indices = @transform_18, window_bounds = array<i64: 32, 64>}, {pipeline_mode = #tpu.pipeline_mode<synchronous>, transform_indices = @transform_19, window_bounds = array<i64: 1, 64>}, {pipeline_mode = #tpu.pipeline_mode<synchronous>, transform_indices = @transform_20, window_bounds = array<i64: 64, 32>}, {pipeline_mode = #tpu.pipeline_mode<synchronous>, transform_indices = @transform_21, window_bounds = array<i64: 1, 32>}, {pipeline_mode = #tpu.pipeline_mode<synchronous>, transform_indices = @transform_22, window_bounds = array<i64: 32, 64>}, {pipeline_mode = #tpu.pipeline_mode<synchronous>, transform_indices = @transform_23, window_bounds = array<i64: 1, 64>}, {pipeline_mode = #tpu.pipeline_mode<synchronous>, transform_indices = @transform_24, window_bounds = array<i64: 64, 32>}, {pipeline_mode = #tpu.pipeline_mode<synchronous>, transform_indices = @transform_25, window_bounds = array<i64: 1, 32>}, {pipeline_mode = #tpu.pipeline_mode<synchronous>, transform_indices = @transform_26, window_bounds = array<i64: 5, 32>}, {pipeline_mode = #tpu.pipeline_mode<synchronous>, transform_indices = @transform_27, window_bounds = array<i64: 5, 32>}, {pipeline_mode = #tpu.pipeline_mode<synchronous>, transform_indices = @transform_28, window_bounds = array<i64: 8, 32>}, {pipeline_mode = #tpu.pipeline_mode<synchronous>, transform_indices = @transform_29, window_bounds = array<i64: 16, 32>}, {pipeline_mode = #tpu.pipeline_mode<synchronous>, transform_indices = @transform_30, window_bounds = array<i64: 16, 8>}]} {
    %c0 = arith.constant 0 : index
    %c0_0 = arith.constant 0 : index
    %0 = vector.load %arg1[%c0, %c0_0] : memref<8x32xf32, #tpu.memory_space<vmem>>, vector<8x32xf32>
    %c0_1 = arith.constant 0 : index
    %c0_2 = arith.constant 0 : index
    %1 = vector.load %arg2[%c0_1, %c0_2] : memref<16x32xf32, #tpu.memory_space<vmem>>, vector<16x32xf32>
    %c0_3 = arith.constant 0 : index
    %c0_4 = arith.constant 0 : index
    %2 = vector.load %arg3[%c0_3, %c0_4] : memref<16x8xf32, #tpu.memory_space<vmem>>, vector<16x8xf32>
    %c0_5 = arith.constant 0 : index
    %c0_6 = arith.constant 0 : index
    %3 = vector.load %arg4[%c0_5, %c0_6] : memref<16x8xf32, #tpu.memory_space<vmem>>, vector<16x8xf32>
    %c0_7 = arith.constant 0 : index
    %c0_8 = arith.constant 0 : index
    %4 = vector.load %arg5[%c0_7, %c0_8] : memref<8x16xf32, #tpu.memory_space<vmem>>, vector<8x16xf32>
    %c0_9 = arith.constant 0 : index
    %c0_10 = arith.constant 0 : index
    %5 = vector.load %arg6[%c0_9, %c0_10] : memref<32x4xf32, #tpu.memory_space<vmem>>, vector<32x4xf32>
    %c0_11 = arith.constant 0 : index
    %c0_12 = arith.constant 0 : index
    %6 = vector.load %arg7[%c0_11, %c0_12] : memref<4x32xf32, #tpu.memory_space<vmem>>, vector<4x32xf32>
    %c0_13 = arith.constant 0 : index
    %c0_14 = arith.constant 0 : index
    %7 = vector.load %arg27[%c0_13, %c0_14] : memref<5x32xf32, #tpu.memory_space<vmem>>, vector<5x32xf32>
    %c0_15 = arith.constant 0 : index
    %c0_16 = arith.constant 0 : index
    %8 = vector.load %arg28[%c0_15, %c0_16] : memref<5x32xf32, #tpu.memory_space<vmem>>, vector<5x32xf32>
    %c0_17 = arith.constant 0 : index
    %c0_18 = arith.constant 0 : index
    %9 = vector.load %arg9[%c0_17, %c0_18] : memref<32x32xf32, #tpu.memory_space<vmem>>, vector<32x32xf32>
    %cst = arith.constant dense<0.000000e+00> : vector<8x32xf32>
    %10 = tpu.matmul %0, %9, %cst {dimension_numbers = #tpu.dot_dimension_numbers<[1], [0], [0], [1], [0, 0, 1, 1], [], []>} : vector<8x32xf32>, vector<32x32xf32>, vector<8x32xf32> -> vector<8x32xf32>
    %c0_19 = arith.constant 0 : index
    %c0_20 = arith.constant 0 : index
    %11 = vector.load %arg10[%c0_19, %c0_20] : memref<32x64xf32, #tpu.memory_space<vmem>>, vector<32x64xf32>
    %cst_21 = arith.constant dense<0.000000e+00> : vector<16x64xf32>
    %12 = tpu.matmul %1, %11, %cst_21 {dimension_numbers = #tpu.dot_dimension_numbers<[1], [0], [0], [1], [0, 0, 1, 1], [], []>} : vector<16x32xf32>, vector<32x64xf32>, vector<16x64xf32> -> vector<16x64xf32>
    %13 = vector.extract_strided_slice %12 {offsets = [0, 0], sizes = [16, 32], strides = [1, 1]} : vector<16x64xf32> to vector<16x32xf32>
    %14 = vector.extract_strided_slice %12 {offsets = [0, 32], sizes = [16, 32], strides = [1, 1]} : vector<16x64xf32> to vector<16x32xf32>
    %cst_22 = arith.constant dense<0.000000e+00> : vector<16x32xf32>
    %15 = tpu.matmul %3, %10, %cst_22 {dimension_numbers = #tpu.dot_dimension_numbers<[1], [0], [0], [1], [0, 0, 1, 1], [], []>} : vector<16x8xf32>, vector<8x32xf32>, vector<16x32xf32> -> vector<16x32xf32>
    %16 = arith.mulf %15, %13 : vector<16x32xf32>
    %cst_23 = arith.constant dense<0.000000e+00> : vector<16x4xf32>
    %17 = tpu.matmul %16, %5, %cst_23 {dimension_numbers = #tpu.dot_dimension_numbers<[1], [0], [0], [1], [0, 0, 1, 1], [], []>} : vector<16x32xf32>, vector<32x4xf32>, vector<16x4xf32> -> vector<16x4xf32>
    %cst_24 = arith.constant 0.353553385 : f32
    %18 = vector.broadcast %cst_24 : f32 to vector<16x4xf32>
    %19 = arith.mulf %17, %18 : vector<16x4xf32>
    %cst_25 = arith.constant dense<0xFF800000> : vector<4xf32>
    %20 = vector.multi_reduction <maximumf>, %19, %cst_25 [0] : vector<16x4xf32> to vector<4xf32>
    %21 = vector.shape_cast %20 : vector<4xf32> to vector<1x4xf32>
    %22 = vector.broadcast %21 : vector<1x4xf32> to vector<16x4xf32>
    %23 = arith.subf %19, %22 : vector<16x4xf32>
    %24 = math.exp %23 : vector<16x4xf32>
    %cst_26 = arith.constant dense<0.000000e+00> : vector<8x4xf32>
    %25 = tpu.matmul %4, %24, %cst_26 {dimension_numbers = #tpu.dot_dimension_numbers<[1], [0], [0], [1], [0, 0, 1, 1], [], []>} : vector<8x16xf32>, vector<16x4xf32>, vector<8x4xf32> -> vector<8x4xf32>
    %cst_27 = arith.constant dense<0.000000e+00> : vector<16x4xf32>
    %26 = tpu.matmul %3, %25, %cst_27 {dimension_numbers = #tpu.dot_dimension_numbers<[1], [0], [0], [1], [0, 0, 1, 1], [], []>} : vector<16x8xf32>, vector<8x4xf32>, vector<16x4xf32> -> vector<16x4xf32>
    %27 = arith.divf %24, %26 : vector<16x4xf32>
    %cst_28 = arith.constant dense<0.000000e+00> : vector<16x32xf32>
    %28 = tpu.matmul %27, %6, %cst_28 {dimension_numbers = #tpu.dot_dimension_numbers<[1], [0], [0], [1], [0, 0, 1, 1], [], []>} : vector<16x4xf32>, vector<4x32xf32>, vector<16x32xf32> -> vector<16x32xf32>
    %29 = arith.mulf %28, %14 : vector<16x32xf32>
    %cst_29 = arith.constant dense<0.000000e+00> : vector<8x32xf32>
    %30 = tpu.matmul %4, %29, %cst_29 {dimension_numbers = #tpu.dot_dimension_numbers<[1], [0], [0], [1], [0, 0, 1, 1], [], []>} : vector<8x16xf32>, vector<16x32xf32>, vector<8x32xf32> -> vector<8x32xf32>
    %c0_30 = arith.constant 0 : index
    %c0_31 = arith.constant 0 : index
    %31 = vector.load %arg11[%c0_30, %c0_31] : memref<32x32xf32, #tpu.memory_space<vmem>>, vector<32x32xf32>
    %cst_32 = arith.constant dense<0.000000e+00> : vector<8x32xf32>
    %32 = tpu.matmul %30, %31, %cst_32 {dimension_numbers = #tpu.dot_dimension_numbers<[1], [0], [0], [1], [0, 0, 1, 1], [], []>} : vector<8x32xf32>, vector<32x32xf32>, vector<8x32xf32> -> vector<8x32xf32>
    %c0_33 = arith.constant 0 : index
    %c0_34 = arith.constant 0 : index
    %33 = vector.load %arg12[%c0_33, %c0_34] : memref<1x32xf32, #tpu.memory_space<vmem>>, vector<1x32xf32>
    %34 = vector.broadcast %33 : vector<1x32xf32> to vector<8x32xf32>
    %35 = arith.addf %32, %34 : vector<8x32xf32>
    %36 = arith.addf %0, %35 : vector<8x32xf32>
    %37 = vector.extract_strided_slice %7 {offsets = [0, 0], sizes = [1, 32], strides = [1, 1]} : vector<5x32xf32> to vector<1x32xf32>
    %38 = vector.extract_strided_slice %8 {offsets = [0, 0], sizes = [1, 32], strides = [1, 1]} : vector<5x32xf32> to vector<1x32xf32>
    %cst_35 = arith.constant dense<0.000000e+00> : vector<8xf32>
    %39 = vector.multi_reduction <add>, %36, %cst_35 [1] : vector<8x32xf32> to vector<8xf32>
    %40 = vector.shape_cast %39 : vector<8xf32> to vector<8x1xf32>
    %cst_36 = arith.constant 3.200000e+01 : f32
    %41 = vector.broadcast %cst_36 : f32 to vector<8x1xf32>
    %42 = arith.divf %40, %41 : vector<8x1xf32>
    %43 = vector.broadcast %42 : vector<8x1xf32> to vector<8x32xf32>
    %44 = arith.subf %36, %43 : vector<8x32xf32>
    %45 = arith.mulf %44, %44 : vector<8x32xf32>
    %cst_37 = arith.constant dense<0.000000e+00> : vector<8xf32>
    %46 = vector.multi_reduction <add>, %45, %cst_37 [1] : vector<8x32xf32> to vector<8xf32>
    %47 = vector.shape_cast %46 : vector<8xf32> to vector<8x1xf32>
    %cst_38 = arith.constant 3.200000e+01 : f32
    %48 = vector.broadcast %cst_38 : f32 to vector<8x1xf32>
    %49 = arith.divf %47, %48 : vector<8x1xf32>
    %50 = vector.broadcast %42 : vector<8x1xf32> to vector<8x32xf32>
    %51 = arith.subf %36, %50 : vector<8x32xf32>
    %cst_39 = arith.constant 9.99999974E-6 : f32
    %52 = vector.broadcast %cst_39 : f32 to vector<8x1xf32>
    %53 = arith.addf %49, %52 : vector<8x1xf32>
    %54 = math.rsqrt %53 : vector<8x1xf32>
    %55 = vector.broadcast %54 : vector<8x1xf32> to vector<8x32xf32>
    %56 = arith.mulf %51, %55 : vector<8x32xf32>
    %57 = vector.broadcast %37 : vector<1x32xf32> to vector<8x32xf32>
    %58 = arith.mulf %56, %57 : vector<8x32xf32>
    %59 = vector.broadcast %38 : vector<1x32xf32> to vector<8x32xf32>
    %60 = arith.addf %58, %59 : vector<8x32xf32>
    %c0_40 = arith.constant 0 : index
    %c0_41 = arith.constant 0 : index
    %61 = vector.load %arg13[%c0_40, %c0_41] : memref<32x96xf32, #tpu.memory_space<vmem>>, vector<32x96xf32>
    %cst_42 = arith.constant dense<0.000000e+00> : vector<8x96xf32>
    %62 = tpu.matmul %60, %61, %cst_42 {dimension_numbers = #tpu.dot_dimension_numbers<[1], [0], [0], [1], [0, 0, 1, 1], [], []>} : vector<8x32xf32>, vector<32x96xf32>, vector<8x96xf32> -> vector<8x96xf32>
    %63 = vector.extract_strided_slice %62 {offsets = [0, 0], sizes = [8, 32], strides = [1, 1]} : vector<8x96xf32> to vector<8x32xf32>
    %64 = vector.extract_strided_slice %62 {offsets = [0, 32], sizes = [8, 64], strides = [1, 1]} : vector<8x96xf32> to vector<8x64xf32>
    %c0_43 = arith.constant 0 : index
    %c0_44 = arith.constant 0 : index
    %65 = vector.load %arg14[%c0_43, %c0_44] : memref<32x32xf32, #tpu.memory_space<vmem>>, vector<32x32xf32>
    %cst_45 = arith.constant dense<0.000000e+00> : vector<16x32xf32>
    %66 = tpu.matmul %1, %65, %cst_45 {dimension_numbers = #tpu.dot_dimension_numbers<[1], [0], [0], [1], [0, 0, 1, 1], [], []>} : vector<16x32xf32>, vector<32x32xf32>, vector<16x32xf32> -> vector<16x32xf32>
    %67 = math.tanh %66 : vector<16x32xf32>
    %cst_46 = arith.constant dense<0.000000e+00> : vector<16x32xf32>
    %68 = tpu.matmul %3, %63, %cst_46 {dimension_numbers = #tpu.dot_dimension_numbers<[1], [0], [0], [1], [0, 0, 1, 1], [], []>} : vector<16x8xf32>, vector<8x32xf32>, vector<16x32xf32> -> vector<16x32xf32>
    %cst_47 = arith.constant dense<0.000000e+00> : vector<16x64xf32>
    %69 = tpu.matmul %2, %64, %cst_47 {dimension_numbers = #tpu.dot_dimension_numbers<[1], [0], [0], [1], [0, 0, 1, 1], [], []>} : vector<16x8xf32>, vector<8x64xf32>, vector<16x64xf32> -> vector<16x64xf32>
    %70 = vector.extract_strided_slice %69 {offsets = [0, 0], sizes = [16, 32], strides = [1, 1]} : vector<16x64xf32> to vector<16x32xf32>
    %71 = vector.extract_strided_slice %69 {offsets = [0, 32], sizes = [16, 32], strides = [1, 1]} : vector<16x64xf32> to vector<16x32xf32>
    %72 = arith.mulf %70, %68 : vector<16x32xf32>
    %73 = arith.mulf %72, %67 : vector<16x32xf32>
    %cst_48 = arith.constant dense<0.000000e+00> : vector<16x4xf32>
    %74 = tpu.matmul %73, %5, %cst_48 {dimension_numbers = #tpu.dot_dimension_numbers<[1], [0], [0], [1], [0, 0, 1, 1], [], []>} : vector<16x32xf32>, vector<32x4xf32>, vector<16x4xf32> -> vector<16x4xf32>
    %cst_49 = arith.constant 0.353553385 : f32
    %75 = vector.broadcast %cst_49 : f32 to vector<16x4xf32>
    %76 = arith.mulf %74, %75 : vector<16x4xf32>
    %cst_50 = arith.constant dense<0xFF800000> : vector<4xf32>
    %77 = vector.multi_reduction <maximumf>, %76, %cst_50 [0] : vector<16x4xf32> to vector<4xf32>
    %78 = vector.shape_cast %77 : vector<4xf32> to vector<1x4xf32>
    %79 = vector.broadcast %78 : vector<1x4xf32> to vector<16x4xf32>
    %80 = arith.subf %76, %79 : vector<16x4xf32>
    %81 = math.exp %80 : vector<16x4xf32>
    %cst_51 = arith.constant dense<0.000000e+00> : vector<8x4xf32>
    %82 = tpu.matmul %4, %81, %cst_51 {dimension_numbers = #tpu.dot_dimension_numbers<[1], [0], [0], [1], [0, 0, 1, 1], [], []>} : vector<8x16xf32>, vector<16x4xf32>, vector<8x4xf32> -> vector<8x4xf32>
    %cst_52 = arith.constant dense<0.000000e+00> : vector<16x4xf32>
    %83 = tpu.matmul %3, %82, %cst_52 {dimension_numbers = #tpu.dot_dimension_numbers<[1], [0], [0], [1], [0, 0, 1, 1], [], []>} : vector<16x8xf32>, vector<8x4xf32>, vector<16x4xf32> -> vector<16x4xf32>
    %84 = arith.divf %81, %83 : vector<16x4xf32>
    %cst_53 = arith.constant dense<0.000000e+00> : vector<16x32xf32>
    %85 = tpu.matmul %84, %6, %cst_53 {dimension_numbers = #tpu.dot_dimension_numbers<[1], [0], [0], [1], [0, 0, 1, 1], [], []>} : vector<16x4xf32>, vector<4x32xf32>, vector<16x32xf32> -> vector<16x32xf32>
    %86 = arith.mulf %85, %71 : vector<16x32xf32>
    %cst_54 = arith.constant dense<0.000000e+00> : vector<8x32xf32>
    %87 = tpu.matmul %4, %86, %cst_54 {dimension_numbers = #tpu.dot_dimension_numbers<[1], [0], [0], [1], [0, 0, 1, 1], [], []>} : vector<8x16xf32>, vector<16x32xf32>, vector<8x32xf32> -> vector<8x32xf32>
    %c0_55 = arith.constant 0 : index
    %c0_56 = arith.constant 0 : index
    %88 = vector.load %arg15[%c0_55, %c0_56] : memref<32x32xf32, #tpu.memory_space<vmem>>, vector<32x32xf32>
    %cst_57 = arith.constant dense<0.000000e+00> : vector<8x32xf32>
    %89 = tpu.matmul %87, %88, %cst_57 {dimension_numbers = #tpu.dot_dimension_numbers<[1], [0], [0], [1], [0, 0, 1, 1], [], []>} : vector<8x32xf32>, vector<32x32xf32>, vector<8x32xf32> -> vector<8x32xf32>
    %c0_58 = arith.constant 0 : index
    %c0_59 = arith.constant 0 : index
    %90 = vector.load %arg16[%c0_58, %c0_59] : memref<1x32xf32, #tpu.memory_space<vmem>>, vector<1x32xf32>
    %91 = vector.broadcast %90 : vector<1x32xf32> to vector<8x32xf32>
    %92 = arith.addf %89, %91 : vector<8x32xf32>
    %c0_60 = arith.constant 0 : index
    %c0_61 = arith.constant 0 : index
    %93 = vector.load %arg17[%c0_60, %c0_61] : memref<32x32xf32, #tpu.memory_space<vmem>>, vector<32x32xf32>
    %cst_62 = arith.constant dense<0.000000e+00> : vector<16x32xf32>
    %94 = tpu.matmul %73, %93, %cst_62 {dimension_numbers = #tpu.dot_dimension_numbers<[1], [0], [0], [1], [0, 0, 1, 1], [], []>} : vector<16x32xf32>, vector<32x32xf32>, vector<16x32xf32> -> vector<16x32xf32>
    %c0_63 = arith.constant 0 : index
    %c0_64 = arith.constant 0 : index
    %95 = vector.load %arg18[%c0_63, %c0_64] : memref<1x32xf32, #tpu.memory_space<vmem>>, vector<1x32xf32>
    %96 = vector.broadcast %95 : vector<1x32xf32> to vector<16x32xf32>
    %97 = arith.addf %94, %96 : vector<16x32xf32>
    %c0_65 = arith.constant 0 : index
    %c0_66 = arith.constant 0 : index
    %98 = vector.load %arg8[%c0_65, %c0_66] : memref<32x8xf32, #tpu.memory_space<vmem>>, vector<32x8xf32>
    %cst_67 = arith.constant dense<0.000000e+00> : vector<16x8xf32>
    %99 = tpu.matmul %73, %98, %cst_67 {dimension_numbers = #tpu.dot_dimension_numbers<[1], [0], [0], [1], [0, 0, 1, 1], [], []>} : vector<16x32xf32>, vector<32x8xf32>, vector<16x8xf32> -> vector<16x8xf32>
    %c0_68 = arith.constant 0 : index
    %c0_69 = arith.constant 0 : index
    %100 = vector.load %arg31[%c0_68, %c0_69] : memref<16x8xf32, #tpu.memory_space<vmem>>, vector<16x8xf32>
    tpu.vector_store %arg31[%c0_68, %c0_69], %99 {strides = array<i32>} : memref<16x8xf32, #tpu.memory_space<vmem>>, vector<16x8xf32>,
    %101 = arith.addf %60, %92 : vector<8x32xf32>
    %102 = vector.extract_strided_slice %7 {offsets = [1, 0], sizes = [1, 32], strides = [1, 1]} : vector<5x32xf32> to vector<1x32xf32>
    %103 = vector.extract_strided_slice %8 {offsets = [1, 0], sizes = [1, 32], strides = [1, 1]} : vector<5x32xf32> to vector<1x32xf32>
    %cst_70 = arith.constant dense<0.000000e+00> : vector<8xf32>
    %104 = vector.multi_reduction <add>, %101, %cst_70 [1] : vector<8x32xf32> to vector<8xf32>
    %105 = vector.shape_cast %104 : vector<8xf32> to vector<8x1xf32>
    %cst_71 = arith.constant 3.200000e+01 : f32
    %106 = vector.broadcast %cst_71 : f32 to vector<8x1xf32>
    %107 = arith.divf %105, %106 : vector<8x1xf32>
    %108 = vector.broadcast %107 : vector<8x1xf32> to vector<8x32xf32>
    %109 = arith.subf %101, %108 : vector<8x32xf32>
    %110 = arith.mulf %109, %109 : vector<8x32xf32>
    %cst_72 = arith.constant dense<0.000000e+00> : vector<8xf32>
    %111 = vector.multi_reduction <add>, %110, %cst_72 [1] : vector<8x32xf32> to vector<8xf32>
    %112 = vector.shape_cast %111 : vector<8xf32> to vector<8x1xf32>
    %cst_73 = arith.constant 3.200000e+01 : f32
    %113 = vector.broadcast %cst_73 : f32 to vector<8x1xf32>
    %114 = arith.divf %112, %113 : vector<8x1xf32>
    %115 = vector.broadcast %107 : vector<8x1xf32> to vector<8x32xf32>
    %116 = arith.subf %101, %115 : vector<8x32xf32>
    %cst_74 = arith.constant 9.99999974E-6 : f32
    %117 = vector.broadcast %cst_74 : f32 to vector<8x1xf32>
    %118 = arith.addf %114, %117 : vector<8x1xf32>
    %119 = math.rsqrt %118 : vector<8x1xf32>
    %120 = vector.broadcast %119 : vector<8x1xf32> to vector<8x32xf32>
    %121 = arith.mulf %116, %120 : vector<8x32xf32>
    %122 = vector.broadcast %102 : vector<1x32xf32> to vector<8x32xf32>
    %123 = arith.mulf %121, %122 : vector<8x32xf32>
    %124 = vector.broadcast %103 : vector<1x32xf32> to vector<8x32xf32>
    %125 = arith.addf %123, %124 : vector<8x32xf32>
    %126 = arith.addf %1, %97 : vector<16x32xf32>
    %127 = vector.extract_strided_slice %7 {offsets = [2, 0], sizes = [1, 32], strides = [1, 1]} : vector<5x32xf32> to vector<1x32xf32>
    %128 = vector.extract_strided_slice %8 {offsets = [2, 0], sizes = [1, 32], strides = [1, 1]} : vector<5x32xf32> to vector<1x32xf32>
    %cst_75 = arith.constant dense<0.000000e+00> : vector<16xf32>
    %129 = vector.multi_reduction <add>, %126, %cst_75 [1] : vector<16x32xf32> to vector<16xf32>
    %130 = vector.shape_cast %129 : vector<16xf32> to vector<16x1xf32>
    %cst_76 = arith.constant 3.200000e+01 : f32
    %131 = vector.broadcast %cst_76 : f32 to vector<16x1xf32>
    %132 = arith.divf %130, %131 : vector<16x1xf32>
    %133 = vector.broadcast %132 : vector<16x1xf32> to vector<16x32xf32>
    %134 = arith.subf %126, %133 : vector<16x32xf32>
    %135 = arith.mulf %134, %134 : vector<16x32xf32>
    %cst_77 = arith.constant dense<0.000000e+00> : vector<16xf32>
    %136 = vector.multi_reduction <add>, %135, %cst_77 [1] : vector<16x32xf32> to vector<16xf32>
    %137 = vector.shape_cast %136 : vector<16xf32> to vector<16x1xf32>
    %cst_78 = arith.constant 3.200000e+01 : f32
    %138 = vector.broadcast %cst_78 : f32 to vector<16x1xf32>
    %139 = arith.divf %137, %138 : vector<16x1xf32>
    %140 = vector.broadcast %132 : vector<16x1xf32> to vector<16x32xf32>
    %141 = arith.subf %126, %140 : vector<16x32xf32>
    %cst_79 = arith.constant 9.99999974E-6 : f32
    %142 = vector.broadcast %cst_79 : f32 to vector<16x1xf32>
    %143 = arith.addf %139, %142 : vector<16x1xf32>
    %144 = math.rsqrt %143 : vector<16x1xf32>
    %145 = vector.broadcast %144 : vector<16x1xf32> to vector<16x32xf32>
    %146 = arith.mulf %141, %145 : vector<16x32xf32>
    %147 = vector.broadcast %127 : vector<1x32xf32> to vector<16x32xf32>
    %148 = arith.mulf %146, %147 : vector<16x32xf32>
    %149 = vector.broadcast %128 : vector<1x32xf32> to vector<16x32xf32>
    %150 = arith.addf %148, %149 : vector<16x32xf32>
    %c0_80 = arith.constant 0 : index
    %c0_81 = arith.constant 0 : index
    %151 = vector.load %arg19[%c0_80, %c0_81] : memref<32x64xf32, #tpu.memory_space<vmem>>, vector<32x64xf32>
    %cst_82 = arith.constant dense<0.000000e+00> : vector<8x64xf32>
    %152 = tpu.matmul %125, %151, %cst_82 {dimension_numbers = #tpu.dot_dimension_numbers<[1], [0], [0], [1], [0, 0, 1, 1], [], []>} : vector<8x32xf32>, vector<32x64xf32>, vector<8x64xf32> -> vector<8x64xf32>
    %c0_83 = arith.constant 0 : index
    %c0_84 = arith.constant 0 : index
    %153 = vector.load %arg20[%c0_83, %c0_84] : memref<1x64xf32, #tpu.memory_space<vmem>>, vector<1x64xf32>
    %154 = vector.broadcast %153 : vector<1x64xf32> to vector<8x64xf32>
    %155 = arith.addf %152, %154 : vector<8x64xf32>
    %cst_85 = arith.constant 0.000000e+00 : f32
    %156 = vector.broadcast %cst_85 : f32 to vector<8x64xf32>
    %157 = arith.maximumf %155, %156 : vector<8x64xf32>
    %c0_86 = arith.constant 0 : index
    %c0_87 = arith.constant 0 : index
    %158 = vector.load %arg21[%c0_86, %c0_87] : memref<64x32xf32, #tpu.memory_space<vmem>>, vector<64x32xf32>
    %cst_88 = arith.constant dense<0.000000e+00> : vector<8x32xf32>
    %159 = tpu.matmul %157, %158, %cst_88 {dimension_numbers = #tpu.dot_dimension_numbers<[1], [0], [0], [1], [0, 0, 1, 1], [], []>} : vector<8x64xf32>, vector<64x32xf32>, vector<8x32xf32> -> vector<8x32xf32>
    %c0_89 = arith.constant 0 : index
    %c0_90 = arith.constant 0 : index
    %160 = vector.load %arg22[%c0_89, %c0_90] : memref<1x32xf32, #tpu.memory_space<vmem>>, vector<1x32xf32>
    %161 = vector.broadcast %160 : vector<1x32xf32> to vector<8x32xf32>
    %162 = arith.addf %159, %161 : vector<8x32xf32>
    %163 = arith.addf %125, %162 : vector<8x32xf32>
    %164 = vector.extract_strided_slice %7 {offsets = [3, 0], sizes = [1, 32], strides = [1, 1]} : vector<5x32xf32> to vector<1x32xf32>
    %165 = vector.extract_strided_slice %8 {offsets = [3, 0], sizes = [1, 32], strides = [1, 1]} : vector<5x32xf32> to vector<1x32xf32>
    %cst_91 = arith.constant dense<0.000000e+00> : vector<8xf32>
    %166 = vector.multi_reduction <add>, %163, %cst_91 [1] : vector<8x32xf32> to vector<8xf32>
    %167 = vector.shape_cast %166 : vector<8xf32> to vector<8x1xf32>
    %cst_92 = arith.constant 3.200000e+01 : f32
    %168 = vector.broadcast %cst_92 : f32 to vector<8x1xf32>
    %169 = arith.divf %167, %168 : vector<8x1xf32>
    %170 = vector.broadcast %169 : vector<8x1xf32> to vector<8x32xf32>
    %171 = arith.subf %163, %170 : vector<8x32xf32>
    %172 = arith.mulf %171, %171 : vector<8x32xf32>
    %cst_93 = arith.constant dense<0.000000e+00> : vector<8xf32>
    %173 = vector.multi_reduction <add>, %172, %cst_93 [1] : vector<8x32xf32> to vector<8xf32>
    %174 = vector.shape_cast %173 : vector<8xf32> to vector<8x1xf32>
    %cst_94 = arith.constant 3.200000e+01 : f32
    %175 = vector.broadcast %cst_94 : f32 to vector<8x1xf32>
    %176 = arith.divf %174, %175 : vector<8x1xf32>
    %177 = vector.broadcast %169 : vector<8x1xf32> to vector<8x32xf32>
    %178 = arith.subf %163, %177 : vector<8x32xf32>
    %cst_95 = arith.constant 9.99999974E-6 : f32
    %179 = vector.broadcast %cst_95 : f32 to vector<8x1xf32>
    %180 = arith.addf %176, %179 : vector<8x1xf32>
    %181 = math.rsqrt %180 : vector<8x1xf32>
    %182 = vector.broadcast %181 : vector<8x1xf32> to vector<8x32xf32>
    %183 = arith.mulf %178, %182 : vector<8x32xf32>
    %184 = vector.broadcast %164 : vector<1x32xf32> to vector<8x32xf32>
    %185 = arith.mulf %183, %184 : vector<8x32xf32>
    %186 = vector.broadcast %165 : vector<1x32xf32> to vector<8x32xf32>
    %187 = arith.addf %185, %186 : vector<8x32xf32>
    %c0_96 = arith.constant 0 : index
    %c0_97 = arith.constant 0 : index
    %188 = vector.load %arg23[%c0_96, %c0_97] : memref<32x64xf32, #tpu.memory_space<vmem>>, vector<32x64xf32>
    %cst_98 = arith.constant dense<0.000000e+00> : vector<16x64xf32>
    %189 = tpu.matmul %150, %188, %cst_98 {dimension_numbers = #tpu.dot_dimension_numbers<[1], [0], [0], [1], [0, 0, 1, 1], [], []>} : vector<16x32xf32>, vector<32x64xf32>, vector<16x64xf32> -> vector<16x64xf32>
    %c0_99 = arith.constant 0 : index
    %c0_100 = arith.constant 0 : index
    %190 = vector.load %arg24[%c0_99, %c0_100] : memref<1x64xf32, #tpu.memory_space<vmem>>, vector<1x64xf32>
    %191 = vector.broadcast %190 : vector<1x64xf32> to vector<16x64xf32>
    %192 = arith.addf %189, %191 : vector<16x64xf32>
    %cst_101 = arith.constant 0.000000e+00 : f32
    %193 = vector.broadcast %cst_101 : f32 to vector<16x64xf32>
    %194 = arith.maximumf %192, %193 : vector<16x64xf32>
    %c0_102 = arith.constant 0 : index
    %c0_103 = arith.constant 0 : index
    %195 = vector.load %arg25[%c0_102, %c0_103] : memref<64x32xf32, #tpu.memory_space<vmem>>, vector<64x32xf32>
    %cst_104 = arith.constant dense<0.000000e+00> : vector<16x32xf32>
    %196 = tpu.matmul %194, %195, %cst_104 {dimension_numbers = #tpu.dot_dimension_numbers<[1], [0], [0], [1], [0, 0, 1, 1], [], []>} : vector<16x64xf32>, vector<64x32xf32>, vector<16x32xf32> -> vector<16x32xf32>
    %c0_105 = arith.constant 0 : index
    %c0_106 = arith.constant 0 : index
    %197 = vector.load %arg26[%c0_105, %c0_106] : memref<1x32xf32, #tpu.memory_space<vmem>>, vector<1x32xf32>
    %198 = vector.broadcast %197 : vector<1x32xf32> to vector<16x32xf32>
    %199 = arith.addf %196, %198 : vector<16x32xf32>
    %200 = arith.addf %150, %199 : vector<16x32xf32>
    %201 = vector.extract_strided_slice %7 {offsets = [4, 0], sizes = [1, 32], strides = [1, 1]} : vector<5x32xf32> to vector<1x32xf32>
    %202 = vector.extract_strided_slice %8 {offsets = [4, 0], sizes = [1, 32], strides = [1, 1]} : vector<5x32xf32> to vector<1x32xf32>
    %cst_107 = arith.constant dense<0.000000e+00> : vector<16xf32>
    %203 = vector.multi_reduction <add>, %200, %cst_107 [1] : vector<16x32xf32> to vector<16xf32>
    %204 = vector.shape_cast %203 : vector<16xf32> to vector<16x1xf32>
    %cst_108 = arith.constant 3.200000e+01 : f32
    %205 = vector.broadcast %cst_108 : f32 to vector<16x1xf32>
    %206 = arith.divf %204, %205 : vector<16x1xf32>
    %207 = vector.broadcast %206 : vector<16x1xf32> to vector<16x32xf32>
    %208 = arith.subf %200, %207 : vector<16x32xf32>
    %209 = arith.mulf %208, %208 : vector<16x32xf32>
    %cst_109 = arith.constant dense<0.000000e+00> : vector<16xf32>
    %210 = vector.multi_reduction <add>, %209, %cst_109 [1] : vector<16x32xf32> to vector<16xf32>
    %211 = vector.shape_cast %210 : vector<16xf32> to vector<16x1xf32>
    %cst_110 = arith.constant 3.200000e+01 : f32
    %212 = vector.broadcast %cst_110 : f32 to vector<16x1xf32>
    %213 = arith.divf %211, %212 : vector<16x1xf32>
    %214 = vector.broadcast %206 : vector<16x1xf32> to vector<16x32xf32>
    %215 = arith.subf %200, %214 : vector<16x32xf32>
    %cst_111 = arith.constant 9.99999974E-6 : f32
    %216 = vector.broadcast %cst_111 : f32 to vector<16x1xf32>
    %217 = arith.addf %213, %216 : vector<16x1xf32>
    %218 = math.rsqrt %217 : vector<16x1xf32>
    %219 = vector.broadcast %218 : vector<16x1xf32> to vector<16x32xf32>
    %220 = arith.mulf %215, %219 : vector<16x32xf32>
    %221 = vector.broadcast %201 : vector<1x32xf32> to vector<16x32xf32>
    %222 = arith.mulf %220, %221 : vector<16x32xf32>
    %223 = vector.broadcast %202 : vector<1x32xf32> to vector<16x32xf32>
    %224 = arith.addf %222, %223 : vector<16x32xf32>
    %c0_112 = arith.constant 0 : index
    %c0_113 = arith.constant 0 : index
    %225 = vector.load %arg29[%c0_112, %c0_113] : memref<8x32xf32, #tpu.memory_space<vmem>>, vector<8x32xf32>
    tpu.vector_store %arg29[%c0_112, %c0_113], %187 {strides = array<i32>} : memref<8x32xf32, #tpu.memory_space<vmem>>, vector<8x32xf32>,
    %c0_114 = arith.constant 0 : index
    %c0_115 = arith.constant 0 : index
    %226 = vector.load %arg30[%c0_114, %c0_115] : memref<16x32xf32, #tpu.memory_space<vmem>>, vector<16x32xf32>
    tpu.vector_store %arg30[%c0_114, %c0_115], %224 {strides = array<i32>} : memref<16x32xf32, #tpu.memory_space<vmem>>, vector<16x32xf32>,
    return
  }
  func.func @transform_0(%arg0: i32) -> (i32, i32) {
    %c0_i32 = arith.constant 0 : i32
    %c0_i32_0 = arith.constant 0 : i32
    %c0_i32_1 = arith.constant 0 : i32
    return %c0_i32, %c0_i32_0 : i32, i32
  }
  func.func @transform_1(%arg0: i32) -> (i32, i32) {
    %c0_i32 = arith.constant 0 : i32
    %c0_i32_0 = arith.constant 0 : i32
    %c0_i32_1 = arith.constant 0 : i32
    return %c0_i32, %c0_i32_0 : i32, i32
  }
  func.func @transform_2(%arg0: i32) -> (i32, i32) {
    %c0_i32 = arith.constant 0 : i32
    %c0_i32_0 = arith.constant 0 : i32
    %c0_i32_1 = arith.constant 0 : i32
    return %c0_i32, %c0_i32_0 : i32, i32
  }
  func.func @transform_3(%arg0: i32) -> (i32, i32) {
    %c0_i32 = arith.constant 0 : i32
    %c0_i32_0 = arith.constant 0 : i32
    %c0_i32_1 = arith.constant 0 : i32
    return %c0_i32, %c0_i32_0 : i32, i32
  }
  func.func @transform_4(%arg0: i32) -> (i32, i32) {
    %c0_i32 = arith.constant 0 : i32
    %c0_i32_0 = arith.constant 0 : i32
    %c0_i32_1 = arith.constant 0 : i32
    return %c0_i32, %c0_i32_0 : i32, i32
  }
  func.func @transform_5(%arg0: i32) -> (i32, i32) {
    %c0_i32 = arith.constant 0 : i32
    %c0_i32_0 = arith.constant 0 : i32
    %c0_i32_1 = arith.constant 0 : i32
    return %c0_i32, %c0_i32_0 : i32, i32
  }
  func.func @transform_6(%arg0: i32) -> (i32, i32) {
    %c0_i32 = arith.constant 0 : i32
    %c0_i32_0 = arith.constant 0 : i32
    %c0_i32_1 = arith.constant 0 : i32
    return %c0_i32, %c0_i32_0 : i32, i32
  }
  func.func @transform_7(%arg0: i32) -> (i32, i32) {
    %c0_i32 = arith.constant 0 : i32
    %c0_i32_0 = arith.constant 0 : i32
    %c0_i32_1 = arith.constant 0 : i32
    return %c0_i32, %c0_i32_0 : i32, i32
  }
  func.func @transform_8(%arg0: i32) -> (i32, i32) {
    %c0_i32 = arith.constant 0 : i32
    %c0_i32_0 = arith.constant 0 : i32
    %c0_i32_1 = arith.constant 0 : i32
    return %c0_i32, %c0_i32_0 : i32, i32
  }
  func.func @transform_9(%arg0: i32) -> (i32, i32) {
    %c0_i32 = arith.constant 0 : i32
    %c0_i32_0 = arith.constant 0 : i32
    %c0_i32_1 = arith.constant 0 : i32
    return %c0_i32, %c0_i32_0 : i32, i32
  }
  func.func @transform_10(%arg0: i32) -> (i32, i32) {
    %c0_i32 = arith.constant 0 : i32
    %c0_i32_0 = arith.constant 0 : i32
    %c0_i32_1 = arith.constant 0 : i32
    return %c0_i32, %c0_i32_0 : i32, i32
  }
  func.func @transform_11(%arg0: i32) -> (i32, i32) {
    %c0_i32 = arith.constant 0 : i32
    %c0_i32_0 = arith.constant 0 : i32
    %c0_i32_1 = arith.constant 0 : i32
    return %c0_i32, %c0_i32_0 : i32, i32
  }
  func.func @transform_12(%arg0: i32) -> (i32, i32) {
    %c0_i32 = arith.constant 0 : i32
    %c0_i32_0 = arith.constant 0 : i32
    %c0_i32_1 = arith.constant 0 : i32
    return %c0_i32, %c0_i32_0 : i32, i32
  }
  func.func @transform_13(%arg0: i32) -> (i32, i32) {
    %c0_i32 = arith.constant 0 : i32
    %c0_i32_0 = arith.constant 0 : i32
    %c0_i32_1 = arith.constant 0 : i32
    return %c0_i32, %c0_i32_0 : i32, i32
  }
  func.func @transform_14(%arg0: i32) -> (i32, i32) {
    %c0_i32 = arith.constant 0 : i32
    %c0_i32_0 = arith.constant 0 : i32
    %c0_i32_1 = arith.constant 0 : i32
    return %c0_i32, %c0_i32_0 : i32, i32
  }
  func.func @transform_15(%arg0: i32) -> (i32, i32) {
    %c0_i32 = arith.constant 0 : i32
    %c0_i32_0 = arith.constant 0 : i32
    %c0_i32_1 = arith.constant 0 : i32
    return %c0_i32, %c0_i32_0 : i32, i32
  }
  func.func @transform_16(%arg0: i32) -> (i32, i32) {
    %c0_i32 = arith.constant 0 : i32
    %c0_i32_0 = arith.constant 0 : i32
    %c0_i32_1 = arith.constant 0 : i32
    return %c0_i32, %c0_i32_0 : i32, i32
  }
  func.func @transform_17(%arg0: i32) -> (i32, i32) {
    %c0_i32 = arith.constant 0 : i32
    %c0_i32_0 = arith.constant 0 : i32
    %c0_i32_1 = arith.constant 0 : i32
    return %c0_i32, %c0_i32_0 : i32, i32
  }
  func.func @transform_18(%arg0: i32) -> (i32, i32) {
    %c0_i32 = arith.constant 0 : i32
    %c0_i32_0 = arith.constant 0 : i32
    %c0_i32_1 = arith.constant 0 : i32
    return %c0_i32, %c0_i32_0 : i32, i32
  }
  func.func @transform_19(%arg0: i32) -> (i32, i32) {
    %c0_i32 = arith.constant 0 : i32
    %c0_i32_0 = arith.constant 0 : i32
    %c0_i32_1 = arith.constant 0 : i32
    return %c0_i32, %c0_i32_0 : i32, i32
  }
  func.func @transform_20(%arg0: i32) -> (i32, i32) {
    %c0_i32 = arith.constant 0 : i32
    %c0_i32_0 = arith.constant 0 : i32
    %c0_i32_1 = arith.constant 0 : i32
    return %c0_i32, %c0_i32_0 : i32, i32
  }
  func.func @transform_21(%arg0: i32) -> (i32, i32) {
    %c0_i32 = arith.constant 0 : i32
    %c0_i32_0 = arith.constant 0 : i32
    %c0_i32_1 = arith.constant 0 : i32
    return %c0_i32, %c0_i32_0 : i32, i32
  }
  func.func @transform_22(%arg0: i32) -> (i32, i32) {
    %c0_i32 = arith.constant 0 : i32
    %c0_i32_0 = arith.constant 0 : i32
    %c0_i32_1 = arith.constant 0 : i32
    return %c0_i32, %c0_i32_0 : i32, i32
  }
  func.func @transform_23(%arg0: i32) -> (i32, i32) {
    %c0_i32 = arith.constant 0 : i32
    %c0_i32_0 = arith.constant 0 : i32
    %c0_i32_1 = arith.constant 0 : i32
    return %c0_i32, %c0_i32_0 : i32, i32
  }
  func.func @transform_24(%arg0: i32) -> (i32, i32) {
    %c0_i32 = arith.constant 0 : i32
    %c0_i32_0 = arith.constant 0 : i32
    %c0_i32_1 = arith.constant 0 : i32
    return %c0_i32, %c0_i32_0 : i32, i32
  }
  func.func @transform_25(%arg0: i32) -> (i32, i32) {
    %c0_i32 = arith.constant 0 : i32
    %c0_i32_0 = arith.constant 0 : i32
    %c0_i32_1 = arith.constant 0 : i32
    return %c0_i32, %c0_i32_0 : i32, i32
  }
  func.func @transform_26(%arg0: i32) -> (i32, i32) {
    %c0_i32 = arith.constant 0 : i32
    %c0_i32_0 = arith.constant 0 : i32
    %c0_i32_1 = arith.constant 0 : i32
    return %c0_i32, %c0_i32_0 : i32, i32
  }
  func.func @transform_27(%arg0: i32) -> (i32, i32) {
    %c0_i32 = arith.constant 0 : i32
    %c0_i32_0 = arith.constant 0 : i32
    %c0_i32_1 = arith.constant 0 : i32
    return %c0_i32, %c0_i32_0 : i32, i32
  }
  func.func @transform_28(%arg0: i32) -> (i32, i32) {
    %c0_i32 = arith.constant 0 : i32
    %c0_i32_0 = arith.constant 0 : i32
    %c0_i32_1 = arith.constant 0 : i32
    return %c0_i32, %c0_i32_0 : i32, i32
  }
  func.func @transform_29(%arg0: i32) -> (i32, i32) {
    %c0_i32 = arith.constant 0 : i32
    %c0_i32_0 = arith.constant 0 : i32
    %c0_i32_1 = arith.constant 0 : i32
    return %c0_i32, %c0_i32_0 : i32, i32
  }
  func.func @transform_30(%arg0: i32) -> (i32, i32) {
    %c0_i32 = arith.constant 0 : i32
    %c0_i32_0 = arith.constant 0 : i32
    %c0_i32_1 = arith.constant 0 : i32
    return %c0_i32, %c0_i32_0 : i32, i32
  }
}

</mosaic_0001>

<bundles_post_ra>
// kernel: crysformer_layer.1
= control target key start
LH: loop header
LB: loop body
LE: loop exit
PB: predicated region body
PF: predicated region fallthrough
CT: control target
= control target key end

     0   :  { %s3141_s6 = smov 1   ;;  %s3142_s10 = smov 2   ;;  %s3669_s0 = inlined_call_operand.smem [shape: u32[31], index: -1, kind: input, shape index: {}] }
   0x1   :  { %s3191_s5 = sld [smem:[%s3669_s0]]   ;;  %s3143_s14 = smov 3  }
   0x2   :  { %s3196_s9 = sld [smem:[%s3669_s0 + %s3141_s6]]   ;;  %s3144_s18 = smov 4  }
   0x3   :  { %s3201_s13 = sld [smem:[%s3669_s0 + %s3142_s10]]   ;;  %s3145_s22 = smov 5  }
   0x4   :  { %s3206_s17 = sld [smem:[%s3669_s0 + %s3143_s14]]   ;;  %s3146_s26 = smov 6  }
   0x5   :  { %s3211_s21 = sld [smem:[%s3669_s0 + %s3144_s18]]   ;;  %s3147_s30 = smov 7  }
   0x6   :  { %s3216_s25 = sld [smem:[%s3669_s0 + %s3145_s22]]   ;;  %s3148_s4 = smov 8  }
   0x7   :  { %s3221_s29 = sld [smem:[%s3669_s0 + %s3146_s26]]   ;;  %s3149_s10 = smov 9  }
   0x8   :  { %s3226_s3 = sld [smem:[%s3669_s0 + %s3147_s30]]   ;;  %s3150_s15 = smov 10  }
   0x9   :  { %3680 = sst [smem:[#allocation19_spill]] %s3201_s13  ;;  %s3151_s20 = smov 11  }
   0xa   :  { %s3231_s8 = sld [smem:[%s3669_s0 + %s3148_s4]]   ;;  %s3152_s26 = smov 12  }
   0xb   :  { %s3236_s14 = sld [smem:[%s3669_s0 + %s3149_s10]]   ;;  %s3153_s1 = smov 13  }
   0xc   :  { %s3241_s19 = sld [smem:[%s3669_s0 + %s3150_s15]]   ;;  %s3154_s7 = smov 14  }
   0xd   :  { %s3246_s24 = sld [smem:[%s3669_s0 + %s3151_s20]]   ;;  %s3155_s15 = smov 15  }
   0xe   :  { %3681 = sst [smem:[#allocation20_spill]] %s3226_s3  ;;  %s3156_s22 = smov 16  }
   0xf   :  { %s3251_s30 = sld [smem:[%s3669_s0 + %s3152_s26]]   ;;  %s3157_s28 = smov 17  }
  0x10   :  { %s3256_s6 = sld [smem:[%s3669_s0 + %s3153_s1]]  }
  0x11   :  { %s3261_s12 = sld [smem:[%s3669_s0 + %s3154_s7]]   ;;  %s3158_s7 = smov 18  }
  0x12   :  { %s3266_s20 = sld [smem:[%s3669_s0 + %s3155_s15]]   ;;  %s3159_s15 = smov 19  }
  0x13   :  { %s3271_s27 = sld [smem:[%s3669_s0 + %s3156_s22]]   ;;  %s3160_s22 = smov 20  }
  0x14   :  { %s3276_s4 = sld [smem:[%s3669_s0 + %s3157_s28]]   ;;  %s3161_s28 = smov 21  }
  0x15   :  { %3682 = sst [smem:[#allocation21_spill]] %s3251_s30 }
  0x16   :  { %3683 = sst [smem:[#allocation22_spill]] %s3256_s6 }
  0x17   :  { %3684 = sst [smem:[#allocation23_spill]] %s3261_s12 }
  0x18   :  { %s3281_s3 = sld [smem:[%s3669_s0 + %s3158_s7]]   ;;  %s3162_s7 = smov 22  }
  0x19   :  { %3685 = sst [smem:[#allocation24_spill]] %s3271_s27 }
  0x1a   :  { %s3286_s12 = sld [smem:[%s3669_s0 + %s3159_s15]]   ;;  %s3163_s15 = smov 23  }
  0x1b   :  { %s3291_s27 = sld [smem:[%s3669_s0 + %s3160_s22]]   ;;  %s3164_s22 = smov 24  }
  0x1c   :  { %s3296_s13 = sld [smem:[%s3669_s0 + %s3161_s28]]   ;;  %s3165_s28 = smov 25  }
  0x1e   :  { %3686 = sst [smem:[#allocation25_spill]] %s3281_s3 }
  0x1f   :  { %s3301_s3 = sld [smem:[%s3669_s0 + %s3162_s7]]   ;;  %s3166_s7 = smov 26  }
  0x20   :  { %3687 = sst [smem:[#allocation26_spill]] %s3286_s12 }
  0x21   :  { %3688 = sst [smem:[#allocation27_spill]] %s3291_s27 }
  0x22   :  { %3689 = sst [smem:[#allocation28_spill]] %s3296_s13 }
  0x23   :  { %s3306_s12 = sld [smem:[%s3669_s0 + %s3163_s15]]   ;;  %s3167_s15 = smov 27  }
  0x24   :  { %s3311_s27 = sld [smem:[%s3669_s0 + %s3164_s22]]   ;;  %s3168_s22 = smov 28  }
  0x25   :  { %3690 = sst [smem:[#allocation29_spill]] %s3301_s3 }
  0x26   :  { %s3316_s13 = sld [smem:[%s3669_s0 + %s3165_s28]]   ;;  %s3169_s28 = smov 29  }
  0x27   :  { %s3321_s3 = sld [smem:[%s3669_s0 + %s3166_s7]]   ;;  %s3170_s7 = smov 30  }
  0x28   :  { %s3326_s6 = sld [smem:[%s3669_s0 + %s3167_s15]]  }
  0x29   :  { %s3336_s30 = sld [smem:[%s3669_s0 + %s3169_s28]]  }
  0x2a   :  { %3691 = sst [smem:[#allocation30_spill]] %s3311_s27 }
  0x2b   :  { %s3331_s27 = sld [smem:[%s3669_s0 + %s3168_s22]]  }
  0x2d   :  { %3692 = sst [smem:[#allocation31_spill]] %s3321_s3 }
  0x2e   :  { %s3341_s3 = sld [smem:[%s3669_s0 + %s3170_s7]]  }
  0x2f   :  { %67 = vsyncpa [#allocation3], 0 }
  0x30   :  { %68 = vsyncpa [#allocation6], 0 }
  0x31   :  { %69 = vsyncpa [#allocation9], 0 }
  0x32   :  { %70 = vsyncpa [#allocation4], 0 }
  0x33   :  { %71 = vsyncpa [#allocation13], 0  ;;  %s3171_s15 = smov [#allocation5]   ;;  %s3172_s18 = smov [#allocation8]  }
  0x34   :  { %s116_s16 = sshll.u32 %s3171_s15, 4  ;;  %s148_s22 = sshll.u32 %s3172_s18, 4  ;;  %s117_s16 = int_to_ptr.vmem [resolvable:$true] %s116_s16  ;;  %s149_s22 = int_to_ptr.vmem [resolvable:$true] %s148_s22 }
  0x35   :  { %s2999_s23 = scalar_lea.vmem %s117_s16, 16  ;;  %s3003_s26 = scalar_lea.vmem %s117_s16, 32 }
  0x36   :  { %p3000_p0 = scmp.ne.s32.totalorder %s117_s16, %s2999_s23  ;;  %p3004_p1 = scmp.lt.s32.totalorder %s117_s16, %s117_s16 }
  0x37   :  { %p3005_p2 = scmp.lt.s32.totalorder %s3003_s26, %s2999_s23 }
  0x39   :  { %p3006_p3 = por %p3005_p2, %p3004_p1 }
  0x3b   :  { %p3007_p4 = pnand %p3006_p3, %p3000_p0 }
  0x3d   :  { %3010 = shalt.err (!%p3007_p4)
}
  0x3e   :  { %119 = dma.hbm_to_vmem [thread:$0]  %s3266_s20, 16, %s117_s16, [#allocation6]  }
  0x3f   :  { %s3019_s0 = scalar_lea.vmem %s149_s22, 16  ;;  %s3023_s28 = scalar_lea.vmem %s149_s22, 32 }
  0x40   :  { %p3020_p5 = scmp.ne.s32.totalorder %s149_s22, %s3019_s0  ;;  %p3024_p6 = scmp.lt.s32.totalorder %s149_s22, %s149_s22 }
  0x41   :  { %p3025_p7 = scmp.lt.s32.totalorder %s3023_s28, %s3019_s0 }
  0x43   :  { %p3026_p8 = por %p3025_p7, %p3024_p6 }
  0x45   :  { %p3027_p9 = pnand %p3026_p8, %p3020_p5 }
  0x47   :  { %3030 = shalt.err (!%p3027_p9)
}
  0x48   :  { %151 = dma.hbm_to_vmem [thread:$0]  %s3306_s12, 16, %s149_s22, [#allocation9]  }
  0x49   :  { %s3173_s1 = smov [#allocation2]   ;;  %s3174_s7 = smov [#allocation7]  }
  0x4a   :  { %s100_s2 = sshll.u32 %s3173_s1, 4  ;;  %s128_s10 = sshll.u32 %s3174_s7, 4  ;;  %s101_s2 = int_to_ptr.vmem [resolvable:$true] %s100_s2  ;;  %s129_s10 = int_to_ptr.vmem [resolvable:$true] %s128_s10 }
  0x4b   :  { %s3039_s11 = scalar_lea.vmem %s101_s2, 16  ;;  %s3043_s15 = scalar_lea.vmem %s101_s2, 32 }
  0x4c   :  { %p3040_p10 = scmp.ne.s32.totalorder %s101_s2, %s3039_s11  ;;  %p3044_p11 = scmp.lt.s32.totalorder %s101_s2, %s101_s2 }
  0x4d   :  { %p3045_p12 = scmp.lt.s32.totalorder %s3043_s15, %s3039_s11 }
  0x4f   :  { %p3046_p13 = por %p3045_p12, %p3044_p11 }
  0x51   :  { %p3047_p0 = pnand %p3046_p13, %p3040_p10 }
  0x53   :  { %3050 = shalt.err (!%p3047_p0)
}
  0x54   :  { %103 = dma.hbm_to_vmem [thread:$0]  %s3246_s24, 16, %s101_s2, [#allocation3]  }
  0x55   :  { %s3059_s20 = scalar_lea.vmem %s129_s10, 16  ;;  %s3063_s16 = scalar_lea.vmem %s129_s10, 32 }
  0x56   :  { %p3060_p1 = scmp.ne.s32.totalorder %s129_s10, %s3059_s20  ;;  %p3064_p2 = scmp.lt.s32.totalorder %s129_s10, %s129_s10 }
  0x57   :  { %p3065_p3 = scmp.lt.s32.totalorder %s3063_s16, %s3059_s20 }
  0x59   :  { %p3066_p4 = por %p3065_p3, %p3064_p2 }
  0x5b   :  { %p3067_p5 = pnand %p3066_p4, %p3060_p1 }
  0x5d   :  { %3070 = shalt.err (!%p3067_p5)
}
  0x5e   :  { %131 = dma.hbm_to_vmem [thread:$0]  %s3276_s4, 16, %s129_s10, [#allocation6]  }
  0x5f   :  { %s3175_s12 = smov [#allocation10]  }
  0x60   :  { %s160_s18 = sshll.u32 %s3175_s12, 4  ;;  %s161_s18 = int_to_ptr.vmem [resolvable:$true] %s160_s18 }
  0x61   :  { %s3079_s22 = scalar_lea.vmem %s161_s18, 16  ;;  %s3083_s23 = scalar_lea.vmem %s161_s18, 32 }
  0x62   :  { %p3080_p6 = scmp.ne.s32.totalorder %s161_s18, %s3079_s22  ;;  %p3084_p7 = scmp.lt.s32.totalorder %s161_s18, %s161_s18 }
  0x63   :  { %p3085_p8 = scmp.lt.s32.totalorder %s3083_s23, %s3079_s22 }
  0x65   :  { %p3086_p9 = por %p3085_p8, %p3084_p7 }
  0x67   :  { %p3087_p10 = pnand %p3086_p9, %p3080_p6 }
  0x69   :  { %3090 = shalt.err (!%p3087_p10)
}
  0x6a   :  { %163 = dma.hbm_to_vmem [thread:$0]  %s3316_s13, 16, %s161_s18, [#allocation9]  }
  0x6b   :  { %3131 = dma.done.wait [#allocation3], 16  }
  0x6c   :  { %3132 = vsyncadd [#allocation3], 4294967280 }
  0x6d   :  { %3133 = dma.done.wait [#allocation6], 32  }
  0x6e   :  { %3134 = vsyncadd [#allocation6], 4294967264 }
  0x6f   :  { %3135 = dma.done.wait [#allocation9], 32  }
  0x70   :  { %3136 = vsyncadd [#allocation9], 4294967264  ;;  %v3176_v0 = vmov 0.0   ;;  %vm3177_vm0 = vmmov 0   ;;  %v201_v1 = vld [vmem:[%s3231_s8 + $0x18] sm:$0xff]  ;;  %v200_v2 = vld [vmem:[%s3231_s8 + $0x10] sm:$0xff] }
  0x71   :  { %2682 = vmatprep.subr.mxu1 %v3176_v0  ;;  %2690 = vmatprep.mubr.msk.f32.mxu1 %vm3177_vm0, %v3176_v0  ;;  %v199_v3 = vld [vmem:[%s3231_s8 + $0x8] sm:$0xff]  ;;  %v198_v4 = vld [vmem:[%s3231_s8] sm:$0xff]  ;;  %vm202_vm1 = vcmask 261120   ;;  %v279_v6 = vld [vmem:[%s3236_s14 + $0x18] sm:$0xff]  ;;  %vm361_vm2 = vcmask 64512   ;;  %vm528_vm3 = vcmask 31744  }
  0x72   :  { %2683 = vmatpush3.msra.mxu1 %v201_v1  ;;  %v3358_v5 = vld [vmem:[%s3191_s5] sm:$0xff]  ;;  %v278_v8 = vld [vmem:[%s3236_s14 + $0x10] sm:$0xff]  ;;  %v277_v9 = vld [vmem:[%s3236_s14 + $0x8] sm:$0xff]  ;;  %s3178_s5 = smov 96   ;;  %vm544_vm4 = vcmask 130048   ;;  %vm703_vm5 = vcmask 1043456  }
  0x73   :  { %2684 = vmatprep.subr.mxu1 %v3176_v0  ;;  %v3363_v7 = vld [vmem:[%s3196_s9] sm:$0xff]  ;;  %v3373_v11 = vld [vmem:[%s3196_s9 + $0x8] sm:$0xff]  ;;  %v3383_v13 = vld [vmem:[%s3216_s25 + $0x18] sm:$0xff]  ;;  %s3693_s9 = sld [smem:[#allocation21_spill]]  ;;  %vm2116_vm6 = vcmask 523264   ;;  %s3179_s26 = smov [#allocation11]  }
  0x74   :  { %2685 = vmatpush3.msra.mxu1 %v200_v2  ;;  %v276_v10 = vld [vmem:[%s3236_s14] sm:$0xff]  ;;  %v3388_v15 = vld [vmem:[%s3206_s17 + $0x8] sm:$0xff]  ;;  %v3398_v19 = vld [vmem:[%s3216_s25 + $0x10] sm:$0xff]  ;;  %s3694_s13 = sld [smem:[#allocation31_spill]]  ;;  %s2453_s0 = sshll.u32 %s3179_s26, 4  ;;  %s2454_s0 = int_to_ptr.vmem [resolvable:$true] %s2453_s0 }
  0x75   :  { %2686 = vmatprep.subr.mxu1 %v3176_v0  ;;  %v3378_v12 = vld [vmem:[%s3206_s17] sm:$0xff]  ;;  %v3403_v20 = vld [vmem:[%s3216_s25 + $0x8] sm:$0xff]  ;;  %v865_v55 = vld [vmem:[%s3241_s19 + $0x18] sm:$0xff]  ;;  %s3695_s17 = sld [smem:[#allocation22_spill]]  ;;  %s3091_s28 = scalar_lea.vmem %s2454_s0, 128 }
  0x76   :  { %2687 = vmatpush3.msra.mxu1 %v199_v3  ;;  %2706 = vmatprep.mubr.msk.f32.mxu0 %vm361_vm2, %v3378_v12  ;;  %v3408_v21 = vld [vmem:[%s3216_s25] sm:$0xff]  ;;  %v864_v56 = vld [vmem:[%s3241_s19 + $0x10] sm:$0xff]  ;;  %v863_v57 = vld [vmem:[%s3241_s19 + $0x8] sm:$0xff]  ;;  %s3697_s25 = sld [smem:[#allocation23_spill]]  ;;  %p3092_p11 = scmp.ne.s32.totalorder %s2454_s0, %s3091_s28 }
  0x77   :  { %2688 = vmatprep.subr.mxu1 %v3176_v0  ;;  %v3420_v44 = vld [vmem:[%s3211_s21] sm:$0xff]  ;;  %s3696_s21 = sld [smem:[#allocation19_spill]]  ;;  %p3096_p12 = scmp.lt.s32.totalorder %s2454_s0, %s2454_s0 }
  0x78   :  { %2689 = vmatpush3.msra.mxu1 %v198_v4  ;;  %v3430_v48 = vld [vmem:[%s3221_s29] sm:$0xf]  ;;  %s3698_s29 = sld [smem:[#allocation24_spill]]  ;;  %p3097_p13 = scmp.lt.s32.totalorder %s3091_s28, %s3091_s28 }
  0x79   :  { %2691 = vmatmul.mubr.msk.f32.vlgmr.msra.gmra.mxu1 %vm202_vm1, %v3358_v5  ;;  %2693 = vmatprep.subr.mxu1 %v279_v6  ;;  %v862_v1 = vld [vmem:[%s3241_s19] sm:$0xff]  ;;  %s3699_s8 = sld [smem:[#allocation20_spill]] }
  0x7a   :  { %2694 = vmatpush3.msra.mxu1 %v279_v6  ;;  %2701 = vmatprep.mubr.msk.f32.mxu1 %vm202_vm1, %v3363_v7  ;;  %v2528_v4 = vld [vmem:[#allocation2] ss:$0 sm:$0xff]  ;;  %s3700_s14 = sld [smem:[#allocation25_spill]]  ;;  %p3098_p0 = por %p3097_p13, %p3096_p12 }
  0x7b   :  { %2695 = vmatprep.subr.mxu1 %v278_v8  ;;  %s3702_s19 = sld [smem:[#allocation27_spill]] }
  0x7c   :  { %2696 = vmatpush3.msra.mxu1 %v278_v8  ;;  %s3703_s24 = sld [smem:[#allocation30_spill]]  ;;  %p3099_p1 = pnand %p3098_p0, %p3092_p11 }
  0x7d   :  { %2697 = vmatprep.subr.mxu1 %v277_v9  ;;  %s3705_s4 = sld [smem:[#allocation28_spill]] }
  0x7e   :  { %2698 = vmatpush3.msra.mxu1 %v277_v9 }
  0x7f   :  { %2699 = vmatprep.subr.mxu1 %v276_v10 }
  0x80   :  { %2700 = vmatpush3.msra.mxu1 %v276_v10 }
  0x81   :  { %2702 = vmatmul.mubr.msk.f32.vlgmr.msra.gmra.mxu1 %vm202_vm1, %v3373_v11  ;;  %2709 = vmatprep.subr.mxu1 %v3383_v13 }
  0x82   :  { %2710 = vmatpush3.msra.mxu1 %v3383_v13 }
  0x83   :  { %2711 = vmatprep.subr.mxu1 %v3398_v19 }
  0x84   :  { %2712 = vmatpush3.msra.mxu1 %v3398_v19 }
  0x85   :  { %2713 = vmatprep.subr.mxu1 %v3403_v20 }
  0x86   :  { %2714 = vmatpush3.msra.mxu1 %v3403_v20 }
  0x87   :  { %2715 = vmatprep.subr.mxu1 %v3408_v21 }
  0x88   :  { %2716 = vmatpush3.msra.mxu1 %v3408_v21 }
  0x89   :  { %2744 = vmatprep.subr.mxu1 %v3176_v0 }
 0x139   :  { %v272_v14 = vpop.f32.mrf.mxu1 }
 0x13a   :  { %2704 = vmatprep.subr.mxu0 %v272_v14 }
 0x13b   :  { %v2692_v16 = vpop.f32.mrf.mxu1  ;;  %2705 = vmatpush3.msra.mxu0 %v272_v14 }
 0x13c   :  { %2707 = vmatmul.mubr.msk.f32.vlgmr.msra.gmra.mxu0 %vm361_vm2, %v3388_v15  ;;  %2720 = vmatprep.subr.mxu0 %v3176_v0 }
 0x13d   :  { %2724 = vmatprep.mubr.msk.f32.mxu0 %vm3177_vm0, %v3176_v0 }
 0x141   :  { %v2703_v17 = vpop.f32.mrf.mxu1 }
 0x142   :  { %786 = vrot.lane.b32.xlu0 %v2703_v17, %s3178_s5 }
 0x143   :  { %v352_v18 = vpop.f32.mrf.mxu1 }
 0x146   :  { %784 = vrot.lane.b32.xlu0 %v352_v18, %s3178_s5 }
 0x1b4   :  { %v787_v58 = vpop.permute.xlu0 %786 }
 0x1b8   :  { %v785_v61 = vpop.permute.xlu0 %784 }
 0x1fc   :  { %v2708_v22 = vpop.f32.mrf.mxu0 }
 0x1fd   :  { %v444_v25 = vmul.f32 %v2708_v22, %v2703_v17 }
 0x1fe   :  { %v434_v23 = vpop.f32.mrf.mxu0 }
 0x1ff   :  { %v443_v24 = vmul.f32 %v434_v23, %v352_v18 }
 0x201   :  { %2717 = vmatprep.mubr.msk.f32.mxu1 %vm202_vm1, %v443_v24  ;;  %v974_v24 = vld [vmem:[%s3693_s9 + $0x18] sm:$0xff] }
 0x202   :  { %2718 = vmatmul.mubr.msk.f32.vlgmr.msra.gmra.mxu1 %vm202_vm1, %v444_v25  ;;  %v973_v25 = vld [vmem:[%s3693_s9 + $0x10] sm:$0xff] }
 0x203   :  { %2752 = vmatprep.mubr.msk.f32.mxu1 %vm3177_vm0, %v3176_v0  ;;  %2745 = vmatpush3.msra.mxu1 %v865_v55 }
 0x204   :  { %2746 = vmatprep.subr.mxu1 %v3176_v0 }
 0x205   :  { %2747 = vmatpush3.msra.mxu1 %v864_v56 }
 0x206   :  { %2748 = vmatprep.subr.mxu1 %v3176_v0 }
 0x207   :  { %2749 = vmatpush3.msra.mxu1 %v863_v57 }
 0x208   :  { %2750 = vmatprep.subr.mxu1 %v3176_v0 }
 0x209   :  { %2751 = vmatpush3.msra.mxu1 %v862_v1 }
 0x2c2   :  { %v2719_v26 = vpop.f32.mrf.mxu1 }
 0x2c3   :  { %v527_v27 = vmul.f32 0.35355338, %v2719_v26  ;;  %v972_v26 = vld [vmem:[%s3693_s9 + $0x8] sm:$0xff] }
 0x2c4   :  { %v517_v28 = vpop.f32.mrf.mxu1 }
 0x2c5   :  { %v526_v29 = vmul.f32 0.35355338, %v517_v28  ;;  %v530_v30 = vsel %vm528_vm3, %v527_v27, -inf }
 0x2c7   :  { %v529_v31 = vsel %vm528_vm3, %v526_v29, -inf }
 0x2c8   :  { %v531_v32 = vmax.f32 %v529_v31, %v530_v30  ;;  %v961_v30 = vlaneseq }
 0x2ca   :  { %v532_v33 = vrot.slane %v531_v32, 4  ;;  %v3467_v31 = vshrl.u32 %v961_v30, 7  ;;  %v1703_v30 = vld [vmem:[%s3697_s25 + $0x10] sm:$0xff] }
 0x2cc   :  { %v533_v34 = vmax.f32 %v531_v32, %v532_v33  ;;  %v963_v32 = vsub.s32 0, %v3467_v31  ;;  %v3471_v33 = vld [vmem:[%s3694_s13] sm:$0x1f] }
 0x2ce   :  { %v534_v35 = vrot.slane %v533_v34, 2 }
 0x2d0   :  { %v535_v36 = vmax.f32 %v533_v34, %v534_v35  ;;  %v3474_v34 = vld [vmem:[%s3326_s6] sm:$0x1f]  ;;  %v964_v35 = vrot.slane %v3471_v33, %v963_v32  ;;  %s3704_s6 = sld [smem:[#allocation26_spill]] }
 0x2d2   :  { %v536_v37 = vrot.slane %v535_v36, 1 }
 0x2d4   :  { %v537_v38 = vmax.f32 %v535_v36, %v536_v37 }
 0x2d6   :  { %v538_v39 = vsub.f32 %v526_v29, %v537_v38  ;;  %v539_v40 = vsub.f32 %v527_v27, %v537_v38  ;;  %v969_v38 = vrot.slane %v3474_v34, %v963_v32  ;;  %v1702_v32 = vld [vmem:[%s3697_s25 + $0x8] sm:$0xff] }
 0x2d8   :  { %v542_v41 = vmul.f32 1.442695, %v539_v40  ;;  %v540_v42 = vmul.f32 1.442695, %v538_v39 }
 0x2da   :  { %2957 = vpow2.f32 %v542_v41  ;;  %v1051_v41 = vld [vmem:[%s3695_s17 + $0x18] sm:$0xff] }
 0x2db   :  { %2959 = vpow2.f32 %v540_v42  ;;  %v1050_v42 = vld [vmem:[%s3695_s17 + $0x10] sm:$0xff]  ;;  %2766 = vmatprep.subr.mxu1 %v1051_v41 }
 0x2e7   :  { %v2958_v43 = vpop.eup %2957 }
 0x2e8   :  { %2721 = vmatpush3.msra.mxu0 %v2958_v43  ;;  %v2960_v45 = vpop.eup %2959 }
 0x2e9   :  { %2722 = vmatprep.subr.mxu0 %v3176_v0 }
 0x2ea   :  { %2723 = vmatpush3.msra.mxu0 %v2960_v45 }
 0x2eb   :  { %2725 = vmatmul.mubr.msk.f32.vlgmr.msra.gmra.mxu0 %vm544_vm4, %v3420_v44 }
 0x2ec   :  { %2729 = vmatprep.mubr.msk.f32.mxu0 %vm361_vm2, %v3378_v12 }
 0x3ab   :  { %v614_v46 = vpop.f32.mrf.mxu0 }
 0x3ac   :  { %2727 = vmatprep.subr.mxu0 %v614_v46 }
 0x3ad   :  { %v2726_v47 = vpop.f32.mrf.mxu0  ;;  %2728 = vmatpush3.msra.mxu0 %v614_v46 }
 0x3ae   :  { %2730 = vmatmul.mubr.msk.f32.vlgmr.msra.gmra.mxu0 %vm361_vm2, %v3388_v15  ;;  %2732 = vmatprep.subr.msk.mxu0 %vm703_vm5, %v3430_v48 }
 0x3af   :  { %2733 = vmatpush3.msk.msra.mxu0 %vm703_vm5, %v3430_v48 }
 0x3b0   :  { %2737 = vmatprep.subr.mxu0 %v3176_v0 }
 0x46e   :  { %v2731_v49 = vpop.f32.mrf.mxu0 }
 0x46f   :  { %2961 = vrcp.f32 %v2731_v49 }
 0x470   :  { %v684_v50 = vpop.f32.mrf.mxu0 }
 0x471   :  { %2963 = vrcp.f32 %v684_v50 }
 0x47c   :  { %v2962_v51 = vpop.eup %2961 }
 0x47d   :  { %v696_v54 = vmul.f32 %v2962_v51, %v2958_v43  ;;  %v1049_v43 = vld [vmem:[%s3695_s17 + $0x8] sm:$0xff] }
 0x47e   :  { %v2964_v52 = vpop.eup %2963 }
 0x47f   :  { %v694_v53 = vmul.f32 %v2964_v52, %v2960_v45  ;;  %v1048_v45 = vld [vmem:[%s3695_s17] sm:$0xff] }
 0x481   :  { %2734 = vmatprep.mubr.msk.f32.mxu0 %vm528_vm3, %v694_v53 }
 0x482   :  { %2735 = vmatmul.mubr.msk.f32.vlgmr.msra.gmra.mxu0 %vm528_vm3, %v696_v54 }
 0x483   :  { %2741 = vmatprep.mubr.msk.f32.mxu0 %vm3177_vm0, %v3176_v0 }
 0x542   :  { %v2736_v59 = vpop.f32.mrf.mxu0 }
 0x543   :  { %v791_v60 = vmul.f32 %v2736_v59, %v787_v58 }
 0x544   :  { %v773_v62 = vpop.f32.mrf.mxu0 }
 0x545   :  { %v790_v63 = vmul.f32 %v785_v61, %v773_v62  ;;  %2738 = vmatpush3.msra.mxu0 %v791_v60 }
 0x546   :  { %2739 = vmatprep.subr.mxu0 %v3176_v0 }
 0x547   :  { %2740 = vmatpush3.msra.mxu0 %v790_v63 }
 0x548   :  { %2742 = vmatmul.mubr.msk.f32.vlgmr.msra.gmra.mxu0 %vm544_vm4, %v3420_v44  ;;  %2755 = vmatprep.subr.mxu0 %v3176_v0 }
 0x549   :  { %2763 = vmatprep.mubr.msk.f32.mxu0 %vm3177_vm0, %v3176_v0  ;;  %2756 = vmatpush3.msra.mxu0 %v974_v24 }
 0x54a   :  { %2757 = vmatprep.subr.mxu0 %v3176_v0 }
 0x54b   :  { %2758 = vmatpush3.msra.mxu0 %v973_v25 }
 0x54c   :  { %2759 = vmatprep.subr.mxu0 %v3176_v0 }
 0x54d   :  { %2760 = vmatpush3.msra.mxu0 %v972_v26 }
 0x54e   :  { %2761 = vmatprep.subr.mxu0 %v3176_v0 }
 0x608   :  { %v858_v2 = vpop.f32.mrf.mxu0 }
 0x609   :  { %2753 = vmatmul.mubr.msk.f32.vlgmr.msra.gmra.mxu1 %vm202_vm1, %v858_v2 }
 0x60a   :  { %v2743_v3 = vpop.f32.mrf.mxu0  ;;  %2774 = vmatprep.mubr.msk.f32.mxu1 %vm202_vm1, %v3363_v7  ;;  %2767 = vmatpush3.msra.mxu1 %v1051_v41 }
 0x60b   :  { %2768 = vmatprep.subr.mxu1 %v1050_v42 }
 0x60c   :  { %2769 = vmatpush3.msra.mxu1 %v1050_v42 }
 0x60d   :  { %2770 = vmatprep.subr.mxu1 %v1049_v43 }
 0x60e   :  { %2771 = vmatpush3.msra.mxu1 %v1049_v43  ;;  %v1788_v43 = vld [vmem:[%s3698_s29 + $0x18] sm:$0xff] }
 0x60f   :  { %2772 = vmatprep.subr.mxu1 %v1048_v45 }
 0x610   :  { %2773 = vmatpush3.msra.mxu1 %v1048_v45  ;;  %v1787_v45 = vld [vmem:[%s3698_s29 + $0x10] sm:$0xff] }
 0x611   :  { %2775 = vmatmul.mubr.msk.f32.vlgmr.msra.gmra.mxu1 %vm202_vm1, %v3373_v11  ;;  %2787 = vmatprep.subr.mxu1 %v3383_v13 }
 0x612   :  { %2788 = vmatpush3.msra.mxu1 %v3383_v13  ;;  %v186_v13 = vld [vmem:[%s3696_s21] sm:$0xff] }
 0x613   :  { %2789 = vmatprep.subr.mxu1 %v3398_v19 }
 0x614   :  { %2790 = vmatpush3.msra.mxu1 %v3398_v19 }
 0x615   :  { %2791 = vmatprep.subr.mxu1 %v3403_v20 }
 0x616   :  { %2792 = vmatpush3.msra.mxu1 %v3403_v20  ;;  %v187_v20 = vld [vmem:[%s3696_s21 + $0x8] sm:$0xff] }
 0x617   :  { %2793 = vmatprep.subr.mxu1 %v3408_v21 }
 0x618   :  { %2794 = vmatpush3.msra.mxu1 %v3408_v21 }
 0x619   :  { %2810 = vmatprep.subr.msk.mxu1 %vm703_vm5, %v3430_v48 }
 0x6c9   :  { %v942_v6 = vpop.f32.mrf.mxu1 }
 0x6ca   :  { %v943_v8 = vadd.f32 %v2528_v4, %v942_v6 }
 0x6cb   :  { %v2754_v9 = vpop.f32.mrf.mxu1 }
 0x6cc   :  { %v946_v10 = vadd.f32 %v943_v8, %v3358_v5  ;;  %v971_v5 = vld [vmem:[%s3693_s9] sm:$0xff] }
 0x6cd   :  { %2762 = vmatpush3.msra.mxu0 %v971_v5 }
 0x6ce   :  { %v947_v14 = vsel %vm202_vm1, %v946_v10, 0.0 }
 0x6cf   :  { %948 = vadd.xlane.f32.xlu1 %v947_v14 }
 0x6d1   :  { %v2776_v21 = vpop.f32.mrf.mxu1 }
 0x6d3   :  { %v1118_v49 = vpop.f32.mrf.mxu1 }
 0x758   :  { %v949_v16 = vpop.xlane.xlu1 %948 }
 0x759   :  { %v951_v17 = vmul.f32 0.03125, %v949_v16 }
 0x75b   :  { %v952_v18 = vsub.f32 %v946_v10, %v951_v17 }
 0x75d   :  { %v953_v22 = vmul.f32 %v952_v18, %v952_v18 }
 0x75f   :  { %v954_v23 = vsel %vm202_vm1, %v953_v22, 0.0 }
 0x760   :  { %955 = vadd.xlane.f32.xlu1 %v954_v23 }
 0x7e9   :  { %v956_v27 = vpop.xlane.xlu1 %955 }
 0x7ea   :  { %v957_v28 = vmul.f32 0.03125, %v956_v27 }
 0x7ec   :  { %v958_v29 = vadd.f32 1e-05, %v957_v28 }
 0x7ee   :  { %2965 = vrsqrt.f32 %v958_v29 }
 0x7ef   :  { %2967 = vtanh.f32 %v2776_v21  ;;  %v1872_v21 = vld [vmem:[%s3699_s8 + $0x8] sm:$0xff] }
 0x7f0   :  { %2969 = vtanh.f32 %v1118_v49  ;;  %v1871_v49 = vld [vmem:[%s3699_s8] sm:$0xff] }
 0x7fb   :  { %v2966_v36 = vpop.eup %2965 }
 0x7fc   :  { %v960_v37 = vmul.f32 %v2966_v36, %v952_v18  ;;  %v2968_v55 = vpop.eup %2967 }
 0x7fd   :  { %v2970_v57 = vpop.eup %2969 }
 0x7fe   :  { %v965_v39 = vmul.f32 %v964_v35, %v960_v37  ;;  %v1701_v35 = vld [vmem:[%s3697_s25] sm:$0xff] }
 0x800   :  { %v3478_v40 = vadd.f32 %v969_v38, %v965_v39 }
 0x802   :  { %2764 = vmatmul.mubr.msk.f32.vlgmr.msra.gmra.mxu0 %vm202_vm1, %v3478_v40 }
 0x803   :  { %2779 = vmatprep.mubr.msk.f32.mxu0 %vm361_vm2, %v3378_v12 }
 0x8c2   :  { %v1044_v46 = vpop.f32.mrf.mxu0 }
 0x8c3   :  { %1205 = vrot.lane.b32.xlu0 %v1044_v46, %s3178_s5  ;;  %2777 = vmatprep.subr.mxu0 %v1044_v46 }
 0x8c4   :  { %v2765_v47 = vpop.f32.mrf.mxu0  ;;  %2778 = vmatpush3.msra.mxu0 %v1044_v46  ;;  %v1786_v46 = vld [vmem:[%s3698_s29 + $0x8] sm:$0xff] }
 0x8c5   :  { %2780 = vmatmul.mubr.msk.f32.vlgmr.msra.gmra.mxu0 %vm361_vm2, %v3388_v15 }
 0x8c6   :  { %2784 = vmatprep.mubr.msk.f32.mxu0 %vm361_vm2, %v186_v13  ;;  %v1785_v13 = vld [vmem:[%s3698_s29] sm:$0xff] }
 0x935   :  { %v1206_v19 = vpop.permute.xlu0 %1205 }
 0x936   :  { %2782 = vmatprep.subr.mxu0 %v1206_v19 }
 0x937   :  { %2783 = vmatpush3.msra.mxu0 %v1206_v19  ;;  %v1873_v19 = vld [vmem:[%s3699_s8 + $0x10] sm:$0xff] }
 0x938   :  { %2785 = vmatmul.mubr.msk.f32.vlgmr.msra.gmra.mxu0 %vm361_vm2, %v187_v20  ;;  %2798 = vmatprep.subr.mxu0 %v3176_v0 }
 0x939   :  { %2802 = vmatprep.mubr.msk.f32.mxu0 %vm3177_vm0, %v3176_v0 }
 0x985   :  { %v2781_v50 = vpop.f32.mrf.mxu0 }
 0x987   :  { %v1195_v51 = vpop.f32.mrf.mxu0 }
 0x9f8   :  { %v2786_v52 = vpop.f32.mrf.mxu0 }
 0x9f9   :  { %1625 = vrot.lane.b32.xlu1 %v2786_v52, %s3178_s5  ;;  %v1290_v53 = vmul.f32 %v2786_v52, %v2781_v50  ;;  %v2548_v50 = vld [vmem:[#allocation7] ss:$0 sm:$0xff] }
 0x9fa   :  { %v1280_v54 = vpop.f32.mrf.mxu0 }
 0x9fb   :  { %v1289_v56 = vmul.f32 %v1280_v54, %v1195_v51  ;;  %1623 = vrot.lane.b32.xlu0 %v1280_v54, %s3178_s5  ;;  %v3514_v59 = vmul.f32 %v2968_v55, %v1290_v53 }
 0x9fd   :  { %v3512_v58 = vmul.f32 %v2970_v57, %v1289_v56  ;;  %v2546_v57 = vld [vmem:[#allocation5] ss:$0 sm:$0xff] }
 0x9ff   :  { %2795 = vmatprep.mubr.msk.f32.mxu1 %vm202_vm1, %v3512_v58 }
 0xa00   :  { %2796 = vmatmul.mubr.msk.f32.vlgmr.msra.gmra.mxu1 %vm202_vm1, %v3514_v59 }
 0xa01   :  { %2811 = vmatpush3.msk.msra.mxu1 %vm703_vm5, %v3430_v48 }
 0xa02   :  { %2822 = vmatprep.subr.mxu1 %v3176_v0 }
 0xa6b   :  { %v1626_v36 = vpop.permute.xlu1 %1625 }
 0xa6d   :  { %v1624_v39 = vpop.permute.xlu0 %1623 }
 0xac0   :  { %v2797_v60 = vpop.f32.mrf.mxu1 }
 0xac1   :  { %v1375_v61 = vmul.f32 0.35355338, %v2797_v60 }
 0xac2   :  { %v1365_v62 = vpop.f32.mrf.mxu1 }
 0xac3   :  { %v1374_v63 = vmul.f32 0.35355338, %v1365_v62  ;;  %v1377_v1 = vsel %vm528_vm3, %v1375_v61, -inf }
 0xac5   :  { %v1376_v2 = vsel %vm528_vm3, %v1374_v63, -inf }
 0xac6   :  { %v1378_v3 = vmax.f32 %v1376_v2, %v1377_v1 }
 0xac8   :  { %v1379_v4 = vrot.slane %v1378_v3, 4 }
 0xaca   :  { %v1380_v6 = vmax.f32 %v1378_v3, %v1379_v4 }
 0xacc   :  { %v1381_v8 = vrot.slane %v1380_v6, 2 }
 0xace   :  { %v1382_v9 = vmax.f32 %v1380_v6, %v1381_v8 }
 0xad0   :  { %v1383_v10 = vrot.slane %v1382_v9, 1 }
 0xad2   :  { %v1384_v14 = vmax.f32 %v1382_v9, %v1383_v10 }
 0xad4   :  { %v1385_v16 = vsub.f32 %v1374_v63, %v1384_v14  ;;  %v1386_v17 = vsub.f32 %v1375_v61, %v1384_v14 }
 0xad6   :  { %v1389_v48 = vmul.f32 1.442695, %v1386_v17  ;;  %v1387_v18 = vmul.f32 1.442695, %v1385_v16 }
 0xad8   :  { %2971 = vpow2.f32 %v1389_v48 }
 0xad9   :  { %2973 = vpow2.f32 %v1387_v18 }
 0xae5   :  { %v2972_v22 = vpop.eup %2971 }
 0xae6   :  { %2799 = vmatpush3.msra.mxu0 %v2972_v22  ;;  %v2974_v23 = vpop.eup %2973 }
 0xae7   :  { %2800 = vmatprep.subr.mxu0 %v3176_v0 }
 0xae8   :  { %2801 = vmatpush3.msra.mxu0 %v2974_v23 }
 0xae9   :  { %2803 = vmatmul.mubr.msk.f32.vlgmr.msra.gmra.mxu0 %vm544_vm4, %v3420_v44 }
 0xaea   :  { %2807 = vmatprep.mubr.msk.f32.mxu0 %vm361_vm2, %v3378_v12 }
 0xba9   :  { %v1457_v24 = vpop.f32.mrf.mxu0 }
 0xbaa   :  { %2805 = vmatprep.subr.mxu0 %v1457_v24 }
 0xbab   :  { %v2804_v25 = vpop.f32.mrf.mxu0  ;;  %2806 = vmatpush3.msra.mxu0 %v1457_v24  ;;  %v2019_v24 = vld [vmem:[%s3700_s14 + $0x18] sm:$0xff] }
 0xbac   :  { %2808 = vmatmul.mubr.msk.f32.vlgmr.msra.gmra.mxu0 %vm361_vm2, %v3388_v15  ;;  %2815 = vmatprep.subr.mxu0 %v3176_v0  ;;  %v1704_v15 = vld [vmem:[%s3697_s25 + $0x18] sm:$0xff]  ;;  %v2018_v25 = vld [vmem:[%s3700_s14 + $0x10] sm:$0xff] }
 0xbad   :  { %2819 = vmatprep.mubr.msk.f32.mxu0 %vm3177_vm0, %v3176_v0 }
 0xc6c   :  { %v2809_v26 = vpop.f32.mrf.mxu0 }
 0xc6d   :  { %2975 = vrcp.f32 %v2809_v26  ;;  %v2017_v26 = vld [vmem:[%s3700_s14 + $0x8] sm:$0xff] }
 0xc6e   :  { %v1527_v5 = vpop.f32.mrf.mxu0 }
 0xc6f   :  { %2977 = vrcp.f32 %v1527_v5  ;;  %v2016_v5 = vld [vmem:[%s3700_s14] sm:$0xff] }
 0xc7a   :  { %v2976_v12 = vpop.eup %2975 }
 0xc7b   :  { %v1539_v29 = vmul.f32 %v2976_v12, %v2972_v22 }
 0xc7c   :  { %v2978_v27 = vpop.eup %2977 }
 0xc7d   :  { %v1537_v28 = vmul.f32 %v2978_v27, %v2974_v23  ;;  %v2108_v27 = vld [vmem:[%s3702_s19 + $0x38] sm:$0xff] }
 0xc7f   :  { %2812 = vmatprep.mubr.msk.f32.mxu1 %vm528_vm3, %v1537_v28  ;;  %v2107_v28 = vld [vmem:[%s3702_s19 + $0x30] sm:$0xff] }
 0xc80   :  { %2813 = vmatmul.mubr.msk.f32.vlgmr.msra.gmra.mxu1 %vm528_vm3, %v1539_v29  ;;  %v2106_v29 = vld [vmem:[%s3702_s19 + $0x28] sm:$0xff] }
 0xc81   :  { %2830 = vmatprep.mubr.msk.f32.mxu1 %vm3177_vm0, %v3176_v0  ;;  %2823 = vmatpush3.msra.mxu1 %v1704_v15  ;;  %v2105_v15 = vld [vmem:[%s3702_s19 + $0x20] sm:$0xff] }
 0xc82   :  { %2824 = vmatprep.subr.mxu1 %v3176_v0 }
 0xc83   :  { %2825 = vmatpush3.msra.mxu1 %v1703_v30  ;;  %v2104_v30 = vld [vmem:[%s3702_s19 + $0x18] sm:$0xff] }
 0xc84   :  { %2826 = vmatprep.subr.mxu1 %v3176_v0 }
 0xc85   :  { %2827 = vmatpush3.msra.mxu1 %v1702_v32 }
 0xc86   :  { %2828 = vmatprep.subr.mxu1 %v3176_v0 }
 0xc87   :  { %2829 = vmatpush3.msra.mxu1 %v1701_v35 }
 0xd40   :  { %v2814_v37 = vpop.f32.mrf.mxu1 }
 0xd41   :  { %v1630_v38 = vmul.f32 %v2814_v37, %v1626_v36 }
 0xd42   :  { %v1612_v41 = vpop.f32.mrf.mxu1 }
 0xd43   :  { %v1629_v42 = vmul.f32 %v1624_v39, %v1612_v41  ;;  %2816 = vmatpush3.msra.mxu0 %v1630_v38 }
 0xd44   :  { %2817 = vmatprep.subr.mxu0 %v3176_v0 }
 0xd45   :  { %2818 = vmatpush3.msra.mxu0 %v1629_v42 }
 0xd46   :  { %2820 = vmatmul.mubr.msk.f32.vlgmr.msra.gmra.mxu0 %vm544_vm4, %v3420_v44  ;;  %2833 = vmatprep.subr.mxu0 %v1788_v43  ;;  %v1874_v44 = vld [vmem:[%s3699_s8 + $0x18] sm:$0xff] }
 0xd47   :  { %2834 = vmatpush3.msra.mxu0 %v1788_v43  ;;  %2841 = vmatprep.mubr.msk.f32.mxu0 %vm202_vm1, %v3512_v58 }
 0xd48   :  { %2835 = vmatprep.subr.mxu0 %v1787_v45  ;;  %2844 = vmatprep.subr.mxu1 %v1874_v44 }
 0xd49   :  { %2836 = vmatpush3.msra.mxu0 %v1787_v45  ;;  %v1968_v45 = vsub.s32 1, %v3467_v31 }
 0xd4a   :  { %2837 = vmatprep.subr.mxu0 %v1786_v46 }
 0xd4b   :  { %2838 = vmatpush3.msra.mxu0 %v1786_v46  ;;  %v1969_v46 = vrot.slane %v3471_v33, %v1968_v45 }
 0xd4c   :  { %2839 = vmatprep.subr.mxu0 %v1785_v13 }
 0xd4d   :  { %2840 = vmatpush3.msra.mxu0 %v1785_v13  ;;  %v2006_v13 = vsub.s32 2, %v3467_v31 }
 0xd4e   :  { %2842 = vmatmul.mubr.msk.f32.vlgmr.msra.gmra.mxu0 %vm202_vm1, %v3514_v59  ;;  %2855 = vmatprep.subr.mxu0 %v3176_v0 }
 0xd4f   :  { %2863 = vmatprep.mubr.msk.f32.mxu0 %vm3177_vm0, %v3176_v0  ;;  %2856 = vmatpush3.msra.mxu0 %v2019_v24 }
 0xd50   :  { %2857 = vmatprep.subr.mxu0 %v3176_v0 }
 0xd51   :  { %2858 = vmatpush3.msra.mxu0 %v2018_v25 }
 0xd52   :  { %2859 = vmatprep.subr.mxu0 %v3176_v0 }
 0xd53   :  { %2860 = vmatpush3.msra.mxu0 %v2017_v26  ;;  %v2555_v26 = vld [vmem:[%s3705_s4] ss:$0 sm:$0xff] }
 0xd54   :  { %2861 = vmatprep.subr.mxu0 %v3176_v0 }
 0xd55   :  { %2862 = vmatpush3.msra.mxu0 %v2016_v5 }
 0xe06   :  { %v1697_v47 = vpop.f32.mrf.mxu0 }
 0xe07   :  { %2831 = vmatmul.mubr.msk.f32.vlgmr.msra.gmra.mxu1 %vm202_vm1, %v1697_v47 }
 0xe08   :  { %2845 = vmatpush3.msra.mxu1 %v1874_v44  ;;  %2852 = vmatprep.mubr.msk.f32.mxu1 %vm202_vm1, %v3512_v58  ;;  %v2821_v20 = vpop.f32.mrf.mxu0 }
 0xe09   :  { %2846 = vmatprep.subr.mxu1 %v1873_v19 }
 0xe0a   :  { %2847 = vmatpush3.msra.mxu1 %v1873_v19  ;;  %v1974_v19 = vrot.slane %v3474_v34, %v1968_v45 }
 0xe0b   :  { %2848 = vmatprep.subr.mxu1 %v1872_v21 }
 0xe0c   :  { %2849 = vmatpush3.msra.mxu1 %v1872_v21  ;;  %v2007_v21 = vrot.slane %v3471_v33, %v2006_v13 }
 0xe0d   :  { %2850 = vmatprep.subr.mxu1 %v1871_v49 }
 0xe0e   :  { %2851 = vmatpush3.msra.mxu1 %v1871_v49  ;;  %v2843_v51 = vpop.f32.mrf.mxu0 }
 0xe0f   :  { %v1868_v52 = vadd.f32 %v2843_v51, %v2548_v50  ;;  %2853 = vmatmul.mubr.msk.f32.vlgmr.msra.gmra.mxu1 %vm202_vm1, %v3514_v59  ;;  %2866 = vmatprep.subr.mxu1 %v3176_v0 }
 0xe10   :  { %v1862_v53 = vpop.f32.mrf.mxu0  ;;  %2882 = vmatprep.mubr.msk.f32.mxu1 %vm3177_vm0, %v3176_v0  ;;  %2867 = vmatpush3.msra.mxu1 %v2108_v27 }
 0xe11   :  { %v1863_v54 = vadd.f32 %v2548_v50, %v1862_v53  ;;  %v1977_v63 = vadd.f32 %v1868_v52, %v3373_v11  ;;  %2868 = vmatprep.subr.mxu1 %v3176_v0  ;;  %v2013_v52 = vrot.slane %v3474_v34, %v2006_v13 }
 0xe12   :  { %2869 = vmatpush3.msra.mxu1 %v2107_v28 }
 0xe13   :  { %v1976_v55 = vadd.f32 %v1863_v54, %v3363_v7  ;;  %v1981_v7 = vsel %vm202_vm1, %v1977_v63, 0.0  ;;  %2870 = vmatprep.subr.mxu1 %v3176_v0 }
 0xe14   :  { %2871 = vmatpush3.msra.mxu1 %v2106_v29 }
 0xe15   :  { %v1978_v56 = vsel %vm202_vm1, %v1976_v55, 0.0  ;;  %2872 = vmatprep.subr.mxu1 %v3176_v0 }
 0xe16   :  { %1979 = vadd.xlane.f32.xlu1 %v1978_v56  ;;  %2873 = vmatpush3.msra.mxu1 %v2105_v15  ;;  %v2560_v15 = vld [vmem:[#allocation10] ss:$0 sm:$0xff] }
 0xe17   :  { %2874 = vmatprep.subr.mxu1 %v3176_v0 }
 0xe18   :  { %2875 = vmatpush3.msra.mxu1 %v2104_v30 }
 0xe19   :  { %2876 = vmatprep.subr.mxu1 %v3176_v0 }
 0xe9f   :  { %v1980_v3 = vpop.xlane.xlu1 %1979 }
 0xea0   :  { %v1984_v4 = vmul.f32 0.03125, %v1980_v3  ;;  %v2313_v3 = vld [vmem:[%s3703_s24 + $0x28] sm:$0xff] }
 0xec7   :  { %v1781_v58 = vpop.f32.mrf.mxu1 }
 0xec8   :  { %v1782_v60 = vadd.f32 %v2546_v57, %v1781_v58 }
 0xec9   :  { %v2832_v61 = vpop.f32.mrf.mxu1 }
 0xeca   :  { %v1952_v59 = vadd.f32 %v1782_v60, %v3478_v40  ;;  %v3582_v40 = vsub.f32 %v1976_v55, %v1984_v4  ;;  %v2312_v4 = vld [vmem:[%s3703_s24 + $0x20] sm:$0xff] }
 0xecc   :  { %v1953_v62 = vsel %vm202_vm1, %v1952_v59, 0.0  ;;  %v1988_v48 = vmul.f32 %v3582_v40, %v3582_v40 }
 0xecd   :  { %1954 = vadd.xlane.f32.xlu0 %v1953_v62  ;;  %v2103_v62 = vld [vmem:[%s3702_s19 + $0x10] sm:$0xff] }
 0xece   :  { %v1990_v18 = vsel %vm202_vm1, %v1988_v48, 0.0  ;;  %2877 = vmatpush3.msra.mxu1 %v2103_v62 }
 0xecf   :  { %v2854_v1 = vpop.f32.mrf.mxu1  ;;  %2878 = vmatprep.subr.mxu1 %v3176_v0 }
 0xed0   :  { %1951 = vst.msk [vmem:[%s3341_s3 + $0x8] sm:$0xff] %vm361_vm2, %v2854_v1  ;;  %v2102_v1 = vld [vmem:[%s3702_s19 + $0x8] sm:$0xff] }
 0xed1   :  { %v1941_v2 = vpop.f32.mrf.mxu1  ;;  %1982 = vadd.xlane.f32.xlu0 %v1981_v7  ;;  %v2314_v7 = vld [vmem:[%s3703_s24 + $0x30] sm:$0xff]  ;;  %2879 = vmatpush3.msra.mxu1 %v2102_v1 }
 0xed2   :  { %1950 = vst.msk [vmem:[%s3341_s3] sm:$0xff] %vm361_vm2, %v1941_v2  ;;  %s3701_s3 = sld [smem:[#allocation29_spill]]  ;;  %v2101_v2 = vld [vmem:[%s3702_s19] sm:$0xff]  ;;  %2880 = vmatprep.subr.mxu1 %v3176_v0 }
 0xed3   :  { %2881 = vmatpush3.msra.mxu1 %v2101_v2  ;;  %v2553_v0 = vld [vmem:[%s3704_s6] ss:$0 sm:$0xff] }
 0xed8   :  { %v2217_v12 = vld [vmem:[%s3701_s3 + $0x18] sm:$0xff]  ;;  %v2216_v53 = vld [vmem:[%s3701_s3 + $0x10] sm:$0xff]  ;;  %v2215_v56 = vld [vmem:[%s3701_s3 + $0x8] sm:$0xff] }
 0xed9   :  { %2885 = vmatprep.subr.mxu0 %v2217_v12  ;;  %v2214_v60 = vld [vmem:[%s3701_s3] sm:$0xff] }
 0xf56   :  { %v1955_v6 = vpop.xlane.xlu0 %1954 }
 0xf57   :  { %v1956_v8 = vmul.f32 0.03125, %v1955_v6  ;;  %v2311_v6 = vld [vmem:[%s3703_s24 + $0x18] sm:$0xff] }
 0xf59   :  { %v1957_v9 = vsub.f32 %v1952_v59, %v1956_v8  ;;  %v2310_v8 = vld [vmem:[%s3703_s24 + $0x10] sm:$0xff] }
 0xf5a   :  { %v1983_v11 = vpop.xlane.xlu0 %1982 }
 0xf5b   :  { %v1985_v10 = vmul.f32 0.03125, %v1983_v11  ;;  %v1958_v14 = vmul.f32 %v1957_v9, %v1957_v9 }
 0xf5d   :  { %v3584_v16 = vsub.f32 %v1977_v63, %v1985_v10  ;;  %v1959_v17 = vsel %vm202_vm1, %v1958_v14, 0.0  ;;  %v2315_v63 = vld [vmem:[%s3703_s24 + $0x38] sm:$0xff] }
 0xf5e   :  { %1960 = vadd.xlane.f32.xlu0 %v1959_v17  ;;  %v2557_v17 = vld [vmem:[#allocation8] ss:$0 sm:$0xff] }
 0xf5f   :  { %v1989_v22 = vmul.f32 %v3584_v16, %v3584_v16 }
 0xf61   :  { %v1993_v23 = vsel %vm202_vm1, %v1989_v22, 0.0 }
 0xf62   :  { %1991 = vadd.xlane.f32.xlu0 %v1990_v18 }
 0xf66   :  { %1994 = vadd.xlane.f32.xlu0 %v1993_v23 }
 0xfe7   :  { %v1961_v32 = vpop.xlane.xlu0 %1960 }
 0xfe8   :  { %v1962_v35 = vmul.f32 0.03125, %v1961_v32 }
 0xfea   :  { %v1963_v36 = vadd.f32 1e-05, %v1962_v35 }
 0xfeb   :  { %v1992_v37 = vpop.xlane.xlu0 %1991 }
 0xfec   :  { %2979 = vrsqrt.f32 %v1963_v36  ;;  %v1996_v38 = vmul.f32 0.03125, %v1992_v37 }
 0xfee   :  { %v1998_v39 = vadd.f32 1e-05, %v1996_v38 }
 0xfef   :  { %v1995_v41 = vpop.xlane.xlu0 %1994 }
 0xff0   :  { %2981 = vrsqrt.f32 %v1998_v39  ;;  %v1997_v42 = vmul.f32 0.03125, %v1995_v41 }
 0xff2   :  { %v1999_v43 = vadd.f32 1e-05, %v1997_v42 }
 0xff4   :  { %2983 = vrsqrt.f32 %v1999_v43 }
 0xff9   :  { %v2980_v44 = vpop.eup %2979 }
 0xffa   :  { %v1965_v47 = vmul.f32 %v2980_v44, %v1957_v9  ;;  %v2308_v9 = vld [vmem:[%s3703_s24] sm:$0xff] }
 0xffc   :  { %v1970_v20 = vmul.f32 %v1969_v46, %v1965_v47 }
 0xffd   :  { %v2982_v49 = vpop.eup %2981 }
 0xffe   :  { %v3616_v50 = vadd.f32 %v1974_v19, %v1970_v20  ;;  %v2002_v51 = vmul.f32 %v2982_v49, %v3582_v40  ;;  %v2309_v40 = vld [vmem:[%s3703_s24 + $0x8] sm:$0xff] }
0x1000   :  { %2864 = vmatmul.mubr.msk.f32.vlgmr.msra.gmra.mxu0 %vm202_vm1, %v3616_v50  ;;  %v2008_v54 = vmul.f32 %v2007_v21, %v2002_v51 }
0x1001   :  { %v2984_v55 = vpop.eup %2983  ;;  %2886 = vmatpush3.msra.mxu0 %v2217_v12 }
0x1002   :  { %2887 = vmatprep.subr.mxu0 %v2216_v53  ;;  %v2003_v57 = vmul.f32 %v2984_v55, %v3584_v16  ;;  %v3625_v58 = vadd.f32 %v2013_v52, %v2008_v54 }
0x1003   :  { %2888 = vmatpush3.msra.mxu0 %v2216_v53 }
0x1004   :  { %2889 = vmatprep.subr.mxu0 %v2215_v56  ;;  %v2009_v61 = vmul.f32 %v2007_v21, %v2003_v57  ;;  %2893 = vmatprep.mubr.msk.f32.mxu0 %vm202_vm1, %v3625_v58 }
0x1005   :  { %2890 = vmatpush3.msra.mxu0 %v2215_v56 }
0x1006   :  { %v3630_v59 = vadd.f32 %v2013_v52, %v2009_v61  ;;  %2891 = vmatprep.subr.mxu0 %v2214_v60  ;;  %v2206_v61 = vsub.s32 3, %v3467_v31 }
0x1007   :  { %2892 = vmatpush3.msra.mxu0 %v2214_v60 }
0x1008   :  { %2894 = vmatmul.mubr.msk.f32.vlgmr.msra.gmra.mxu0 %vm202_vm1, %v3630_v59  ;;  %2896 = vmatprep.subr.mxu0 %v2315_v63  ;;  %v2207_v1 = vrot.slane %v3471_v33, %v2206_v61 }
0x1009   :  { %2897 = vmatpush3.msra.mxu0 %v2315_v63 }
0x100a   :  { %2898 = vmatprep.subr.mxu0 %v2314_v7 }
0x100b   :  { %2899 = vmatpush3.msra.mxu0 %v2314_v7 }
0x100c   :  { %2900 = vmatprep.subr.mxu0 %v2313_v3 }
0x100d   :  { %2901 = vmatpush3.msra.mxu0 %v2313_v3  ;;  %v2212_v3 = vrot.slane %v3474_v34, %v2206_v61 }
0x100e   :  { %2902 = vmatprep.subr.mxu0 %v2312_v4 }
0x100f   :  { %2903 = vmatpush3.msra.mxu0 %v2312_v4 }
0x1010   :  { %2904 = vmatprep.subr.mxu0 %v2311_v6 }
0x1011   :  { %2905 = vmatpush3.msra.mxu0 %v2311_v6 }
0x1012   :  { %2906 = vmatprep.subr.mxu0 %v2310_v8 }
0x1013   :  { %2907 = vmatpush3.msra.mxu0 %v2310_v8  ;;  %v2434_v8 = vsub.s32 4, %v3467_v31 }
0x1014   :  { %2908 = vmatprep.subr.mxu0 %v2309_v40 }
0x1015   :  { %2909 = vmatpush3.msra.mxu0 %v2309_v40 }
0x1016   :  { %2910 = vmatprep.subr.mxu0 %v2308_v9 }
0x1017   :  { %2911 = vmatpush3.msra.mxu0 %v2308_v9 }
0x10c0   :  { %v2096_v11 = vpop.f32.mrf.mxu0 }
0x10c1   :  { %v2097_v10 = vadd.f32 %v2553_v0, %v2096_v11 }
0x10c2   :  { %v2865_v14 = vpop.f32.mrf.mxu0 }
0x10c3   :  { %v2100_v16 = vmax.f32 %v2097_v10, 0.0 }
0x10c5   :  { %2883 = vmatmul.mubr.msk.f32.vlgmr.msra.gmra.mxu1 %vm2116_vm6, %v2100_v16 }
0x10c8   :  { %v2895_v48 = vpop.f32.mrf.mxu0 }
0x10c9   :  { %v2303_v18 = vadd.f32 %v2895_v48, %v2557_v17 }
0x10ca   :  { %v2297_v22 = vpop.f32.mrf.mxu0 }
0x10cb   :  { %v2298_v23 = vadd.f32 %v2557_v17, %v2297_v22  ;;  %v2307_v25 = vmax.f32 %v2303_v18, 0.0 }
0x10cd   :  { %v2306_v24 = vmax.f32 %v2298_v23, 0.0 }
0x10cf   :  { %2912 = vmatprep.mubr.msk.f32.mxu0 %vm2116_vm6, %v2306_v24 }
0x10d0   :  { %2913 = vmatmul.mubr.msk.f32.vlgmr.msra.gmra.mxu0 %vm2116_vm6, %v2307_v25 }
0x1185   :  { %v2186_v5 = vpop.f32.mrf.mxu1 }
0x1186   :  { %v2187_v12 = vadd.f32 %v2555_v26, %v2186_v5 }
0x1187   :  { %v2884_v27 = vpop.f32.mrf.mxu1 }
0x1188   :  { %v2190_v28 = vadd.f32 %v2187_v12, %v3616_v50 }
0x118a   :  { %v2191_v29 = vsel %vm202_vm1, %v2190_v28, 0.0 }
0x118b   :  { %2192 = vadd.xlane.f32.xlu1 %v2191_v29 }
0x1190   :  { %v2914_v30 = vpop.f32.mrf.mxu0 }
0x1191   :  { %v2401_v32 = vadd.f32 %v2914_v30, %v2560_v15 }
0x1192   :  { %v2395_v35 = vpop.f32.mrf.mxu0 }
0x1193   :  { %v2396_v36 = vadd.f32 %v2560_v15, %v2395_v35  ;;  %v2405_v37 = vadd.f32 %v2401_v32, %v3630_v59 }
0x1195   :  { %v2409_v38 = vsel %vm202_vm1, %v2405_v37, 0.0  ;;  %v2404_v39 = vadd.f32 %v2396_v36, %v3625_v58 }
0x1196   :  { %2410 = vadd.xlane.f32.xlu1 %v2409_v38 }
0x1197   :  { %v2406_v41 = vsel %vm202_vm1, %v2404_v39, 0.0 }
0x1198   :  { %2407 = vadd.xlane.f32.xlu0 %v2406_v41 }
0x1214   :  { %v2193_v42 = vpop.xlane.xlu1 %2192 }
0x1215   :  { %v2194_v43 = vmul.f32 0.03125, %v2193_v42 }
0x1217   :  { %v2195_v45 = vsub.f32 %v2190_v28, %v2194_v43 }
0x1219   :  { %v2196_v46 = vmul.f32 %v2195_v45, %v2195_v45 }
0x121b   :  { %v2197_v13 = vsel %vm202_vm1, %v2196_v46, 0.0 }
0x121c   :  { %2198 = vadd.xlane.f32.xlu0 %v2197_v13 }
0x121f   :  { %v2411_v44 = vpop.xlane.xlu1 %2410 }
0x1220   :  { %v2413_v47 = vmul.f32 0.03125, %v2411_v44 }
0x1221   :  { %v2408_v19 = vpop.xlane.xlu0 %2407 }
0x1222   :  { %v2415_v20 = vsub.f32 %v2405_v37, %v2413_v47  ;;  %v2412_v21 = vmul.f32 0.03125, %v2408_v19 }
0x1224   :  { %v2414_v49 = vsub.f32 %v2404_v39, %v2412_v21  ;;  %v2417_v50 = vmul.f32 %v2415_v20, %v2415_v20 }
0x1226   :  { %v2421_v51 = vsel %vm202_vm1, %v2417_v50, 0.0  ;;  %v2416_v52 = vmul.f32 %v2414_v49, %v2414_v49 }
0x1227   :  { %2422 = vadd.xlane.f32.xlu0 %v2421_v51 }
0x1228   :  { %v2418_v53 = vsel %vm202_vm1, %v2416_v52, 0.0 }
0x1229   :  { %2419 = vadd.xlane.f32.xlu1 %v2418_v53 }
0x12a5   :  { %v2199_v54 = vpop.xlane.xlu0 %2198 }
0x12a6   :  { %v2200_v55 = vmul.f32 0.03125, %v2199_v54 }
0x12a8   :  { %v2201_v56 = vadd.f32 1e-05, %v2200_v55 }
0x12aa   :  { %2985 = vrsqrt.f32 %v2201_v56 }
0x12b0   :  { %v2423_v57 = vpop.xlane.xlu0 %2422 }
0x12b1   :  { %v2425_v58 = vmul.f32 0.03125, %v2423_v57 }
0x12b2   :  { %v2420_v60 = vpop.xlane.xlu1 %2419 }
0x12b3   :  { %v2427_v59 = vadd.f32 1e-05, %v2425_v58  ;;  %v2424_v62 = vmul.f32 0.03125, %v2420_v60 }
0x12b5   :  { %2987 = vrsqrt.f32 %v2427_v59  ;;  %v2426_v63 = vadd.f32 1e-05, %v2424_v62 }
0x12b7   :  { %v2986_v7 = vpop.eup %2985  ;;  %2989 = vrsqrt.f32 %v2426_v63 }
0x12b8   :  { %v2203_v2 = vmul.f32 %v2986_v7, %v2195_v45 }
0x12ba   :  { %v2208_v4 = vmul.f32 %v2207_v1, %v2203_v2 }
0x12bc   :  { %v2213_v6 = vadd.f32 %v2212_v3, %v2208_v4 }
0x12be   :  { %2444 = vst.msk [vmem:[#allocation11] sm:$0xff] %vm202_vm1, %v2213_v6 }
0x12bf   :  { %3102 = shalt.err (!%p3099_p1)
}
0x12c0   :  { %2456 = dma.vmem_to_hbm [thread:$0]  %s2454_s0, 128, %s3331_s27, [#allocation4]   ;;  %v2435_v40 = vrot.slane %v3471_v33, %v2434_v8  ;;  %v2441_v11 = vrot.slane %v3474_v34, %v2434_v8 }
0x12c1   :  { %s3180_s1 = smov [#allocation12]  }
0x12c2   :  { %v2988_v9 = vpop.eup %2987  ;;  %s2462_s2 = sshll.u32 %s3180_s1, 4  ;;  %s2463_s2 = int_to_ptr.vmem [resolvable:$true] %s2462_s2 }
0x12c3   :  { %v2431_v0 = vmul.f32 %v2988_v9, %v2415_v20  ;;  %s3111_s27 = scalar_lea.vmem %s2463_s2, 256  ;;  %p3116_p3 = scmp.lt.s32.totalorder %s2463_s2, %s2463_s2 }
0x12c4   :  { %v2990_v10 = vpop.eup %2989  ;;  %p3112_p2 = scmp.ne.s32.totalorder %s2463_s2, %s3111_s27  ;;  %p3117_p4 = scmp.lt.s32.totalorder %s3111_s27, %s3111_s27 }
0x12c5   :  { %v2430_v14 = vmul.f32 %v2990_v10, %v2414_v49  ;;  %v2437_v31 = vmul.f32 %v2435_v40, %v2431_v0 }
0x12c6   :  { %p3118_p5 = por %p3117_p4, %p3116_p3 }
0x12c7   :  { %v2436_v16 = vmul.f32 %v2435_v40, %v2430_v14  ;;  %v2443_v17 = vadd.f32 %v2441_v11, %v2437_v31 }
0x12c8   :  { %p3119_p6 = pnand %p3118_p5, %p3112_p2 }
0x12c9   :  { %v2442_v48 = vadd.f32 %v2441_v11, %v2436_v16  ;;  %2446 = vst.msk [vmem:[#allocation12 + $0x8] sm:$0xff] %vm202_vm1, %v2443_v17 }
0x12cb   :  { %2445 = vst.msk [vmem:[#allocation12] sm:$0xff] %vm202_vm1, %v2442_v48 }
0x12cc   :  { %3122 = shalt.err (!%p3119_p6)
}
0x12cd   :  { %s3181_s7 = smov 128   ;;  %s3182_s10 = smov 8  }
0x12ce   :  { %2468 = dma.vmem_to_hbm [thread:$0]  %s2463_s2, 256, %s3336_s30, [#allocation13], %s3181_s7, %s3181_s7, %s3182_s10  }
0x12cf   :  { %3137 = dma.done.wait [#allocation4], 128  }
0x12d0   :  { %3138 = vsyncadd [#allocation4], 4294967168 }
0x12d1   :  { %3139 = dma.done.wait [#allocation13], 256  }
0x12d2   :  { %3140 = vsyncadd [#allocation13], 4294967040 }
0x12d3   :  { %2479 = vsyncpa [#allocation3], 1 }
0x12d4   :  { %2480 = vsyncpa [#allocation6], 1 }
0x12d5   :  { %2481 = vsyncpa [#allocation9], 1 }
0x12d6   :  { %2482 = vsyncpa [#allocation4], 1 }
0x12d7   :  { %2483 = vsyncpa [#allocation13], 1 }

</bundles_post_ra>
